<compile_context>
chip_gen: v6e
topology: v6e:2x2x1
jax: 0.10.0
libtpu: 0.0.40
codegen_flags: <defaults>
</compile_context>

<pallas_src>
import functools

import numpy as np
import jax
import jax.numpy as jnp
from jax.experimental import pallas as pl
from jax.experimental.pallas import tpu as pltpu


# ----------------------------------------------------------------------------
# Pallas kernels
# ----------------------------------------------------------------------------
def _fc_fused_kernel(z_ref, w1_ref, b1_ref, w2_ref, b2_ref, o_ref):
    """o = relu(relu(z @ w1 + b1) @ w2 + b2) -- both fc layers in one kernel."""
    h = jnp.dot(z_ref[...], w1_ref[...], preferred_element_type=jnp.float32)
    h = jnp.maximum(h + b1_ref[...], 0.0)
    o = jnp.dot(h, w2_ref[...], preferred_element_type=jnp.float32)
    o_ref[...] = jnp.maximum(o + b2_ref[...], 0.0)


def _convt_bn_kernel(p_ref, w_ref, b_ref, g_ref, bt_ref, mk_ref, o_ref, *,
                     Co, inv_cnt):
    """Transposed parity ConvTranspose GEMM + bias + batch-stat BN + ReLU + border zero.

    p:(4*Ci, M) patches, w:(4*Co, 4*Ci), b:(4*Co, 1), g/bt:(Co, 1), mk:(4, M).
    Output rows are grouped (a, b, co) -- the four sub-pixel parities of each channel.
    Batch statistics are taken over valid (non-border) positions only, pooled across
    the four parity groups (count per channel = B * 2H * 2W).
    """
    y = jnp.dot(w_ref[...], p_ref[...], preferred_element_type=jnp.float32)
    y = y + b_ref[...]
    M = y.shape[1]

    mk = mk_ref[...]                                         # (4, M)
    mask = jnp.concatenate(
        [jnp.broadcast_to(mk[0:1, :], (Co, M)),
         jnp.broadcast_to(mk[1:2, :], (Co, M)),
         jnp.broadcast_to(mk[2:3, :], (Co, M)),
         jnp.broadcast_to(mk[3:4, :], (Co, M))], axis=0)     # (4*Co, M)

    def fold(v):                                             # (4*Co,1) -> (Co,1)
        return v[0:Co] + v[Co:2 * Co] + v[2 * Co:3 * Co] + v[3 * Co:4 * Co]

    s1 = jnp.sum(y * mask, axis=1, keepdims=True)            # (4*Co, 1)
    mean_c = fold(s1) * inv_cnt                              # (Co, 1)
    mean4 = jnp.concatenate([mean_c] * 4, axis=0)            # (4*Co, 1)
    xc = (y - mean4) * mask
    var_c = fold(jnp.sum(xc * xc, axis=1, keepdims=True)) * inv_cnt
    scale_c = g_ref[...] * jax.lax.rsqrt(var_c + 1e-5)
    shift_c = bt_ref[...] - mean_c * scale_c
    scale4 = jnp.concatenate([scale_c] * 4, axis=0)
    shift4 = jnp.concatenate([shift_c] * 4, axis=0)

    # ReLU, then zero the invalid border positions so the pixel shuffle directly
    # produces the next layer's zero-padded (halo) image.
    o_ref[...] = jnp.maximum(y * scale4 + shift4, 0.0) * mask


def _convt_kernel(p_ref, w_ref, b_ref, o_ref):
    """Transposed parity ConvTranspose GEMM + bias + ReLU (final layer, no BN)."""
    y = jnp.dot(w_ref[...], p_ref[...], preferred_element_type=jnp.float32)
    o_ref[...] = jnp.maximum(y + b_ref[...], 0.0)


# ----------------------------------------------------------------------------
# Wrappers
# ----------------------------------------------------------------------------
_VMEM = pl.BlockSpec(memory_space=pltpu.MemorySpace.VMEM)


def fc_fused(z, w1, b1, w2, b2):
    B = z.shape[0]
    N = w2.shape[1]
    return pl.pallas_call(
        _fc_fused_kernel,
        out_shape=jax.ShapeDtypeStruct((B, N), jnp.float32),
        in_specs=[_VMEM] * 5,
        out_specs=_VMEM,
    )(z, w1, b1, w2, b2)


def _parity_valid_mask(B, Hp, Wp):
    """(4, B*Hp*Wp) f32 trace-time constant; rows ordered (a,b)=(0,0),(0,1),(1,0),(1,1).

    Marks GEMM columns whose output position y=2m-1+a, x=2n-1+b lies inside (2H, 2W).
    """
    m = np.arange(Hp)
    n = np.arange(Wp)
    vys = (m >= 1, m <= Hp - 2)      # a = 0, 1
    vxs = (n >= 1, n <= Wp - 2)      # b = 0, 1
    rows = []
    for vy in vys:
        for vx in vxs:
            g = (vy[:, None] & vx[None, :]).astype(np.float32)     # (Hp, Wp)
            rows.append(np.broadcast_to(g[None], (B, Hp, Wp)).reshape(-1))
    return jnp.asarray(np.stack(rows, axis=0))


def conv_transpose_layer(xp, wt, bias, gamma=None, beta=None):
    """ConvTranspose2d(4,2,1) [+ batch-stat BN] + ReLU.

    xp: (Ci, B, H+2, W+2) channel-major activation with a zero halo.
    Returns the next layer's padded image (Co, B, 2H+2, 2W+2) when BN is present,
    or the trimmed NCHW image (B, Co, 2H, 2W) for the final (no-BN) layer.
    """
    Ci, B, Hpad, Wpad = xp.shape
    H, W = Hpad - 2, Wpad - 2
    Hp, Wp = H + 1, W + 1
    M = B * Hp * Wp
    Co = wt.shape[0] // 4

    # Transposed 2x2-neighborhood patch matrix (4*Ci, M); rows grouped (r, c, ci).
    pats = jnp.concatenate(
        [xp[:, :, 0:Hp, 0:Wp], xp[:, :, 0:Hp, 1:Wp + 1],
         xp[:, :, 1:Hp + 1, 0:Wp], xp[:, :, 1:Hp + 1, 1:Wp + 1]],
        axis=0).reshape(4 * Ci, M)

    if gamma is not None:
        mk = _parity_valid_mask(B, Hp, Wp)
        yt = pl.pallas_call(
            functools.partial(_convt_bn_kernel, Co=Co,
                              inv_cnt=1.0 / (B * 4 * H * W)),
            out_shape=jax.ShapeDtypeStruct((4 * Co, M), jnp.float32),
            in_specs=[_VMEM] * 6,
            out_specs=_VMEM,
        )(pats, wt, bias, gamma, beta, mk)
        # Pixel shuffle (a,b) parities into the spatial grid. Because invalid border
        # positions were zeroed in-kernel, this IS the next layer's padded image.
        xp_next = (yt.reshape(2, 2, Co, B, Hp, Wp)
                     .transpose(2, 3, 4, 0, 5, 1)            # (co, b, m, a, n, b2)
                     .reshape(Co, B, 2 * Hp, 2 * Wp))
        return xp_next

    yt = pl.pallas_call(
        _convt_kernel,
        out_shape=jax.ShapeDtypeStruct((4 * Co, M), jnp.float32),
        in_specs=[_VMEM] * 3,
        out_specs=_VMEM,
    )(pats, wt, bias)
    # Final layer: pixel-shuffle straight to NCHW and trim the border halo.
    img = (yt.reshape(2, 2, Co, B, Hp, Wp)
             .transpose(3, 2, 4, 0, 5, 1)                     # (b, co, m, a, n, b2)
             .reshape(B, Co, 2 * Hp, 2 * Wp))
    return img[:, :, 1:2 * H + 1, 1:2 * W + 1]


# ----------------------------------------------------------------------------
# One-time parameter preparation (hoisted out of the jitted forward)
# ----------------------------------------------------------------------------
def prepare_params(p):
    def convt_weight(w):
        # (Ci, Co, 4, 4) -> (4*Co, 4*Ci): Wt[(a,b,co),(r,c,ci)] = w[ci,co,a+2-2r,b+2-2c]
        w = np.asarray(w)
        Co, Ci = w.shape[1], w.shape[0]
        tap = np.array([[2, 3], [0, 1]])                     # tap[r, a] = a + 2 - 2r
        wk = np.transpose(w, (2, 3, 1, 0))                   # (ky, kx, Co, Ci)
        wg = wk[tap][:, :, tap]                              # (r, a, c, b, Co, Ci)
        return jnp.asarray(
            np.transpose(wg, (1, 3, 4, 0, 2, 5)).reshape(4 * Co, 4 * Ci))

    def convt_bias(b):
        b = np.asarray(b)
        return jnp.asarray(np.tile(b, 4).reshape(4 * b.shape[0], 1))

    q = {
        "fc1_w": p["fc1_w"], "fc1_b": p["fc1_b"].reshape(1, -1),
        "fc2_w": p["fc2_w"], "fc2_b": p["fc2_b"].reshape(1, -1),
    }
    for i, name in ((2, "cnn2"), (3, "cnn3"), (4, "cnn4"), (5, "cnn5")):
        q[f"c{i}_w"] = convt_weight(p[f"{name}_w"])
        q[f"c{i}_b"] = convt_bias(p[f"{name}_b"])
        if i < 5:
            q[f"c{i}_g"] = p[f"bn{i}_g"].reshape(-1, 1)
            q[f"c{i}_bt"] = p[f"bn{i}_b"].reshape(-1, 1)
    return q


# ----------------------------------------------------------------------------
# Decoder forward (channel-major internally; NCHW produced once at the end)
# ----------------------------------------------------------------------------
def decoder_forward(z, q):
    B = z.shape[0]
    h = fc_fused(z, q["fc1_w"], q["fc1_b"], q["fc2_w"], q["fc2_b"])     # (B, 512)
    x = h.reshape(B, 32, 4, 4).transpose(1, 0, 2, 3)                    # (32, B, 4, 4)
    x = jnp.pad(x, ((0, 0), (0, 0), (1, 1), (1, 1)))                    # (32, B, 6, 6)
    x = conv_transpose_layer(x, q["c2_w"], q["c2_b"], q["c2_g"], q["c2_bt"])
    x = conv_transpose_layer(x, q["c3_w"], q["c3_b"], q["c3_g"], q["c3_bt"])
    x = conv_transpose_layer(x, q["c4_w"], q["c4_b"], q["c4_g"], q["c4_bt"])
    return conv_transpose_layer(x, q["c5_w"], q["c5_b"])                # (B, C, 64, 64)


# ----------------------------------------------------------------------------
# Pure-JAX reference (for correctness check)
# ----------------------------------------------------------------------------
def decoder_ref(z, p):
    def ct(x, w, b):
        wc = jnp.flip(w, (2, 3)).transpose(1, 0, 2, 3)  # (Co, Ci, 4, 4)
        y = jax.lax.conv_general_dilated(
            x, wc, window_strides=(1, 1), padding=[(2, 2), (2, 2)],
            lhs_dilation=(2, 2), dimension_numbers=("NCHW", "OIHW", "NCHW"))
        return y + b.reshape(1, -1, 1, 1)

    def bn(x, g, b):
        mean = x.mean(axis=(0, 2, 3), keepdims=True)
        var = x.var(axis=(0, 2, 3), keepdims=True)
        return (x - mean) * jax.lax.rsqrt(var + 1e-5) * g.reshape(1, -1, 1, 1) \
               + b.reshape(1, -1, 1, 1)

    h = jnp.maximum(z @ p["fc1_w"] + p["fc1_b"], 0.0)
    h = jnp.maximum(h @ p["fc2_w"] + p["fc2_b"], 0.0)
    x = h.reshape(-1, 32, 4, 4)
    x = jnp.maximum(bn(ct(x, p["cnn2_w"], p["cnn2_b"]), p["bn2_g"], p["bn2_b"]), 0.0)
    x = jnp.maximum(bn(ct(x, p["cnn3_w"], p["cnn3_b"]), p["bn3_g"], p["bn3_b"]), 0.0)
    x = jnp.maximum(bn(ct(x, p["cnn4_w"], p["cnn4_b"]), p["bn4_g"], p["bn4_b"]), 0.0)
    x = jnp.maximum(ct(x, p["cnn5_w"], p["cnn5_b"]), 0.0)
    return x


# ----------------------------------------------------------------------------
# Deterministic parameter init
# ----------------------------------------------------------------------------
def init_params(key, num_channels=3):
    ks = jax.random.split(key, 16)
    f32 = jnp.float32
    return {
        "fc1_w": 0.05 * jax.random.normal(ks[0], (256, 256), f32),
        "fc1_b": 0.01 * jax.random.normal(ks[1], (256,), f32),
        "fc2_w": 0.05 * jax.random.normal(ks[2], (256, 4 * 4 * 32), f32),
        "fc2_b": 0.01 * jax.random.normal(ks[3], (4 * 4 * 32,), f32),
        "cnn2_w": 0.1 * jax.random.normal(ks[4], (32, 16, 4, 4), f32),
        "cnn2_b": 0.01 * jax.random.normal(ks[5], (16,), f32),
        "cnn3_w": 0.1 * jax.random.normal(ks[6], (16, 8, 4, 4), f32),
        "cnn3_b": 0.01 * jax.random.normal(ks[7], (8,), f32),
        "cnn4_w": 0.1 * jax.random.normal(ks[8], (8, 4, 4, 4), f32),
        "cnn4_b": 0.01 * jax.random.normal(ks[9], (4,), f32),
        "cnn5_w": 0.1 * jax.random.normal(ks[10], (4, num_channels, 4, 4), f32),
        "cnn5_b": 0.01 * jax.random.normal(ks[11], (num_channels,), f32),
        "bn2_g": 1.0 + 0.1 * jax.random.normal(ks[12], (16,), f32),
        "bn2_b": 0.1 * jax.random.normal(ks[13], (16,), f32),
        "bn3_g": jnp.ones((8,), f32),
        "bn3_b": jnp.zeros((8,), f32),
        "bn4_g": 1.0 + 0.1 * jax.random.normal(ks[14], (4,), f32),
        "bn4_b": 0.1 * jax.random.normal(ks[15], (4,), f32),
    }


# TODO(synk): `reparametrize` is not part of `forward` and is not implemented here.

if __name__ == "__main__":
    key = jax.random.PRNGKey(0)
    kz, kp = jax.random.split(key)
    B = 2
    z = jax.random.normal(kz, (B, 256), jnp.float32)
    params = init_params(kp, num_channels=3)
    prepped = prepare_params(params)          # one-time weight regrouping (host side)

    fwd = jax.jit(decoder_forward)
    out = fwd(z, prepped)
    out = jax.block_until_ready(out)

    assert out.shape == (B, 3, 64, 64), out.shape
    ref = decoder_ref(z, params)
    assert jnp.allclose(out, ref, rtol=2e-3, atol=2e-3), (
        float(jnp.max(jnp.abs(out - ref))))

    print("KERNEL_OK")
</pallas_src>

<mosaic_0001>
module attributes {stable_mosaic.version = 11 : i64} {
  func.func @_fc_fused_kernel(%arg0: memref<2x256xf32, #tpu.memory_space<vmem>>, %arg1: memref<256x256xf32, #tpu.memory_space<vmem>>, %arg2: memref<1x256xf32, #tpu.memory_space<vmem>>, %arg3: memref<256x512xf32, #tpu.memory_space<vmem>>, %arg4: memref<1x512xf32, #tpu.memory_space<vmem>>, %arg5: memref<2x512xf32, #tpu.memory_space<vmem>>) attributes {dimension_semantics = [], scalar_prefetch = 0 : i64, scratch_operands = 0 : i64, tpu.core_type = #tpu.core_type<tc>} {
    %c0 = arith.constant 0 : index
    %c0_0 = arith.constant 0 : index
    %0 = vector.load %arg0[%c0, %c0_0] : memref<2x256xf32, #tpu.memory_space<vmem>>, vector<2x256xf32>
    %c0_1 = arith.constant 0 : index
    %c0_2 = arith.constant 0 : index
    %1 = vector.load %arg1[%c0_1, %c0_2] : memref<256x256xf32, #tpu.memory_space<vmem>>, vector<256x256xf32>
    %cst = arith.constant dense<0.000000e+00> : vector<2x256xf32>
    %2 = tpu.matmul %0, %1, %cst {dimension_numbers = #tpu.dot_dimension_numbers<[1], [0], [0], [1], [0, 0, 1, 1], [], []>} : vector<2x256xf32>, vector<256x256xf32>, vector<2x256xf32> -> vector<2x256xf32>
    %c0_3 = arith.constant 0 : index
    %c0_4 = arith.constant 0 : index
    %3 = vector.load %arg2[%c0_3, %c0_4] : memref<1x256xf32, #tpu.memory_space<vmem>>, vector<1x256xf32>
    %4 = vector.broadcast %3 : vector<1x256xf32> to vector<2x256xf32>
    %5 = arith.addf %2, %4 : vector<2x256xf32>
    %cst_5 = arith.constant 0.000000e+00 : f32
    %6 = vector.broadcast %cst_5 : f32 to vector<2x256xf32>
    %7 = arith.maximumf %5, %6 : vector<2x256xf32>
    %c0_6 = arith.constant 0 : index
    %c0_7 = arith.constant 0 : index
    %8 = vector.load %arg3[%c0_6, %c0_7] : memref<256x512xf32, #tpu.memory_space<vmem>>, vector<256x512xf32>
    %cst_8 = arith.constant dense<0.000000e+00> : vector<2x512xf32>
    %9 = tpu.matmul %7, %8, %cst_8 {dimension_numbers = #tpu.dot_dimension_numbers<[1], [0], [0], [1], [0, 0, 1, 1], [], []>} : vector<2x256xf32>, vector<256x512xf32>, vector<2x512xf32> -> vector<2x512xf32>
    %c0_9 = arith.constant 0 : index
    %c0_10 = arith.constant 0 : index
    %10 = vector.load %arg4[%c0_9, %c0_10] : memref<1x512xf32, #tpu.memory_space<vmem>>, vector<1x512xf32>
    %11 = vector.broadcast %10 : vector<1x512xf32> to vector<2x512xf32>
    %12 = arith.addf %9, %11 : vector<2x512xf32>
    %cst_11 = arith.constant 0.000000e+00 : f32
    %13 = vector.broadcast %cst_11 : f32 to vector<2x512xf32>
    %14 = arith.maximumf %12, %13 : vector<2x512xf32>
    %c0_12 = arith.constant 0 : index
    %c0_13 = arith.constant 0 : index
    %15 = vector.load %arg5[%c0_12, %c0_13] : memref<2x512xf32, #tpu.memory_space<vmem>>, vector<2x512xf32>
    tpu.vector_store %arg5[%c0_12, %c0_13], %14 {strides = array<i32>} : memref<2x512xf32, #tpu.memory_space<vmem>>, vector<2x512xf32>,
    return
  }
}

module attributes {stable_mosaic.version = 11 : i64} {
  func.func @_convt_bn_kernel(%arg0: memref<128x50xf32, #tpu.memory_space<vmem>>, %arg1: memref<64x128xf32, #tpu.memory_space<vmem>>, %arg2: memref<64x1xf32, #tpu.memory_space<vmem>>, %arg3: memref<16x1xf32, #tpu.memory_space<vmem>>, %arg4: memref<16x1xf32, #tpu.memory_space<vmem>>, %arg5: memref<4x50xf32, #tpu.memory_space<vmem>>, %arg6: memref<64x50xf32, #tpu.memory_space<vmem>>) attributes {dimension_semantics = [], scalar_prefetch = 0 : i64, scratch_operands = 0 : i64, tpu.core_type = #tpu.core_type<tc>} {
    %c0 = arith.constant 0 : index
    %c0_0 = arith.constant 0 : index
    %0 = vector.load %arg1[%c0, %c0_0] : memref<64x128xf32, #tpu.memory_space<vmem>>, vector<64x128xf32>
    %c0_1 = arith.constant 0 : index
    %c0_2 = arith.constant 0 : index
    %1 = vector.load %arg0[%c0_1, %c0_2] : memref<128x50xf32, #tpu.memory_space<vmem>>, vector<128x50xf32>
    %cst = arith.constant dense<0.000000e+00> : vector<64x50xf32>
    %2 = tpu.matmul %0, %1, %cst {dimension_numbers = #tpu.dot_dimension_numbers<[1], [0], [0], [1], [0, 0, 1, 1], [], []>} : vector<64x128xf32>, vector<128x50xf32>, vector<64x50xf32> -> vector<64x50xf32>
    %c0_3 = arith.constant 0 : index
    %c0_4 = arith.constant 0 : index
    %3 = vector.load %arg2[%c0_3, %c0_4] : memref<64x1xf32, #tpu.memory_space<vmem>>, vector<64x1xf32>
    %4 = vector.broadcast %3 : vector<64x1xf32> to vector<64x50xf32>
    %5 = arith.addf %2, %4 : vector<64x50xf32>
    %c0_5 = arith.constant 0 : index
    %c0_6 = arith.constant 0 : index
    %6 = vector.load %arg5[%c0_5, %c0_6] : memref<4x50xf32, #tpu.memory_space<vmem>>, vector<4x50xf32>
    %7 = vector.extract_strided_slice %6 {offsets = [0, 0], sizes = [1, 50], strides = [1, 1]} : vector<4x50xf32> to vector<1x50xf32>
    %8 = vector.shape_cast %7 : vector<1x50xf32> to vector<1x50xf32>
    %9 = vector.broadcast %8 : vector<1x50xf32> to vector<16x50xf32>
    %10 = vector.extract_strided_slice %6 {offsets = [1, 0], sizes = [1, 50], strides = [1, 1]} : vector<4x50xf32> to vector<1x50xf32>
    %11 = vector.shape_cast %10 : vector<1x50xf32> to vector<1x50xf32>
    %12 = vector.broadcast %11 : vector<1x50xf32> to vector<16x50xf32>
    %13 = vector.extract_strided_slice %6 {offsets = [2, 0], sizes = [1, 50], strides = [1, 1]} : vector<4x50xf32> to vector<1x50xf32>
    %14 = vector.shape_cast %13 : vector<1x50xf32> to vector<1x50xf32>
    %15 = vector.broadcast %14 : vector<1x50xf32> to vector<16x50xf32>
    %16 = vector.extract_strided_slice %6 {offsets = [3, 0], sizes = [1, 50], strides = [1, 1]} : vector<4x50xf32> to vector<1x50xf32>
    %17 = vector.shape_cast %16 : vector<1x50xf32> to vector<1x50xf32>
    %18 = vector.broadcast %17 : vector<1x50xf32> to vector<16x50xf32>
    %19 = tpu.concatenate %9, %12, %15, %18 in 0 : vector<16x50xf32>, vector<16x50xf32>, vector<16x50xf32>, vector<16x50xf32> -> vector<64x50xf32>
    %20 = arith.mulf %5, %19 : vector<64x50xf32>
    %cst_7 = arith.constant dense<0.000000e+00> : vector<64xf32>
    %21 = vector.multi_reduction <add>, %20, %cst_7 [1] : vector<64x50xf32> to vector<64xf32>
    %22 = vector.shape_cast %21 : vector<64xf32> to vector<64x1xf32>
    %23 = vector.extract_strided_slice %22 {offsets = [0, 0], sizes = [16, 1], strides = [1, 1]} : vector<64x1xf32> to vector<16x1xf32>
    %24 = vector.extract_strided_slice %22 {offsets = [16, 0], sizes = [16, 1], strides = [1, 1]} : vector<64x1xf32> to vector<16x1xf32>
    %25 = arith.addf %23, %24 : vector<16x1xf32>
    %26 = vector.extract_strided_slice %22 {offsets = [32, 0], sizes = [16, 1], strides = [1, 1]} : vector<64x1xf32> to vector<16x1xf32>
    %27 = arith.addf %25, %26 : vector<16x1xf32>
    %28 = vector.extract_strided_slice %22 {offsets = [48, 0], sizes = [16, 1], strides = [1, 1]} : vector<64x1xf32> to vector<16x1xf32>
    %29 = arith.addf %27, %28 : vector<16x1xf32>
    %cst_8 = arith.constant 7.812500e-03 : f32
    %30 = vector.broadcast %cst_8 : f32 to vector<16x1xf32>
    %31 = arith.mulf %29, %30 : vector<16x1xf32>
    %32 = tpu.concatenate %31, %31, %31, %31 in 0 : vector<16x1xf32>, vector<16x1xf32>, vector<16x1xf32>, vector<16x1xf32> -> vector<64x1xf32>
    %33 = vector.broadcast %32 : vector<64x1xf32> to vector<64x50xf32>
    %34 = arith.subf %5, %33 : vector<64x50xf32>
    %35 = arith.mulf %34, %19 : vector<64x50xf32>
    %36 = arith.mulf %35, %35 : vector<64x50xf32>
    %cst_9 = arith.constant dense<0.000000e+00> : vector<64xf32>
    %37 = vector.multi_reduction <add>, %36, %cst_9 [1] : vector<64x50xf32> to vector<64xf32>
    %38 = vector.shape_cast %37 : vector<64xf32> to vector<64x1xf32>
    %39 = vector.extract_strided_slice %38 {offsets = [0, 0], sizes = [16, 1], strides = [1, 1]} : vector<64x1xf32> to vector<16x1xf32>
    %40 = vector.extract_strided_slice %38 {offsets = [16, 0], sizes = [16, 1], strides = [1, 1]} : vector<64x1xf32> to vector<16x1xf32>
    %41 = arith.addf %39, %40 : vector<16x1xf32>
    %42 = vector.extract_strided_slice %38 {offsets = [32, 0], sizes = [16, 1], strides = [1, 1]} : vector<64x1xf32> to vector<16x1xf32>
    %43 = arith.addf %41, %42 : vector<16x1xf32>
    %44 = vector.extract_strided_slice %38 {offsets = [48, 0], sizes = [16, 1], strides = [1, 1]} : vector<64x1xf32> to vector<16x1xf32>
    %45 = arith.addf %43, %44 : vector<16x1xf32>
    %cst_10 = arith.constant 7.812500e-03 : f32
    %46 = vector.broadcast %cst_10 : f32 to vector<16x1xf32>
    %47 = arith.mulf %45, %46 : vector<16x1xf32>
    %c0_11 = arith.constant 0 : index
    %c0_12 = arith.constant 0 : index
    %48 = vector.load %arg3[%c0_11, %c0_12] : memref<16x1xf32, #tpu.memory_space<vmem>>, vector<16x1xf32>
    %cst_13 = arith.constant 9.99999974E-6 : f32
    %49 = vector.broadcast %cst_13 : f32 to vector<16x1xf32>
    %50 = arith.addf %47, %49 : vector<16x1xf32>
    %51 = math.rsqrt %50 : vector<16x1xf32>
    %52 = arith.mulf %48, %51 : vector<16x1xf32>
    %c0_14 = arith.constant 0 : index
    %c0_15 = arith.constant 0 : index
    %53 = vector.load %arg4[%c0_14, %c0_15] : memref<16x1xf32, #tpu.memory_space<vmem>>, vector<16x1xf32>
    %54 = arith.mulf %31, %52 : vector<16x1xf32>
    %55 = arith.subf %53, %54 : vector<16x1xf32>
    %56 = tpu.concatenate %52, %52, %52, %52 in 0 : vector<16x1xf32>, vector<16x1xf32>, vector<16x1xf32>, vector<16x1xf32> -> vector<64x1xf32>
    %57 = tpu.concatenate %55, %55, %55, %55 in 0 : vector<16x1xf32>, vector<16x1xf32>, vector<16x1xf32>, vector<16x1xf32> -> vector<64x1xf32>
    %58 = vector.broadcast %56 : vector<64x1xf32> to vector<64x50xf32>
    %59 = arith.mulf %5, %58 : vector<64x50xf32>
    %60 = vector.broadcast %57 : vector<64x1xf32> to vector<64x50xf32>
    %61 = arith.addf %59, %60 : vector<64x50xf32>
    %cst_16 = arith.constant 0.000000e+00 : f32
    %62 = vector.broadcast %cst_16 : f32 to vector<64x50xf32>
    %63 = arith.maximumf %61, %62 : vector<64x50xf32>
    %64 = arith.mulf %63, %19 : vector<64x50xf32>
    %c0_17 = arith.constant 0 : index
    %c0_18 = arith.constant 0 : index
    %65 = vector.load %arg6[%c0_17, %c0_18] : memref<64x50xf32, #tpu.memory_space<vmem>>, vector<64x50xf32>
    tpu.vector_store %arg6[%c0_17, %c0_18], %64 {strides = array<i32>} : memref<64x50xf32, #tpu.memory_space<vmem>>, vector<64x50xf32>,
    return
  }
}

module attributes {stable_mosaic.version = 11 : i64} {
  func.func @_convt_bn_kernel(%arg0: memref<64x162xf32, #tpu.memory_space<vmem>>, %arg1: memref<32x64xf32, #tpu.memory_space<vmem>>, %arg2: memref<32x1xf32, #tpu.memory_space<vmem>>, %arg3: memref<8x1xf32, #tpu.memory_space<vmem>>, %arg4: memref<8x1xf32, #tpu.memory_space<vmem>>, %arg5: memref<4x162xf32, #tpu.memory_space<vmem>>, %arg6: memref<32x162xf32, #tpu.memory_space<vmem>>) attributes {dimension_semantics = [], scalar_prefetch = 0 : i64, scratch_operands = 0 : i64, tpu.core_type = #tpu.core_type<tc>} {
    %c0 = arith.constant 0 : index
    %c0_0 = arith.constant 0 : index
    %0 = vector.load %arg1[%c0, %c0_0] : memref<32x64xf32, #tpu.memory_space<vmem>>, vector<32x64xf32>
    %c0_1 = arith.constant 0 : index
    %c0_2 = arith.constant 0 : index
    %1 = vector.load %arg0[%c0_1, %c0_2] : memref<64x162xf32, #tpu.memory_space<vmem>>, vector<64x162xf32>
    %cst = arith.constant dense<0.000000e+00> : vector<32x162xf32>
    %2 = tpu.matmul %0, %1, %cst {dimension_numbers = #tpu.dot_dimension_numbers<[1], [0], [0], [1], [0, 0, 1, 1], [], []>} : vector<32x64xf32>, vector<64x162xf32>, vector<32x162xf32> -> vector<32x162xf32>
    %c0_3 = arith.constant 0 : index
    %c0_4 = arith.constant 0 : index
    %3 = vector.load %arg2[%c0_3, %c0_4] : memref<32x1xf32, #tpu.memory_space<vmem>>, vector<32x1xf32>
    %4 = vector.broadcast %3 : vector<32x1xf32> to vector<32x162xf32>
    %5 = arith.addf %2, %4 : vector<32x162xf32>
    %c0_5 = arith.constant 0 : index
    %c0_6 = arith.constant 0 : index
    %6 = vector.load %arg5[%c0_5, %c0_6] : memref<4x162xf32, #tpu.memory_space<vmem>>, vector<4x162xf32>
    %7 = vector.extract_strided_slice %6 {offsets = [0, 0], sizes = [1, 162], strides = [1, 1]} : vector<4x162xf32> to vector<1x162xf32>
    %8 = vector.shape_cast %7 : vector<1x162xf32> to vector<1x162xf32>
    %9 = vector.broadcast %8 : vector<1x162xf32> to vector<8x162xf32>
    %10 = vector.extract_strided_slice %6 {offsets = [1, 0], sizes = [1, 162], strides = [1, 1]} : vector<4x162xf32> to vector<1x162xf32>
    %11 = vector.shape_cast %10 : vector<1x162xf32> to vector<1x162xf32>
    %12 = vector.broadcast %11 : vector<1x162xf32> to vector<8x162xf32>
    %13 = vector.extract_strided_slice %6 {offsets = [2, 0], sizes = [1, 162], strides = [1, 1]} : vector<4x162xf32> to vector<1x162xf32>
    %14 = vector.shape_cast %13 : vector<1x162xf32> to vector<1x162xf32>
    %15 = vector.broadcast %14 : vector<1x162xf32> to vector<8x162xf32>
    %16 = vector.extract_strided_slice %6 {offsets = [3, 0], sizes = [1, 162], strides = [1, 1]} : vector<4x162xf32> to vector<1x162xf32>
    %17 = vector.shape_cast %16 : vector<1x162xf32> to vector<1x162xf32>
    %18 = vector.broadcast %17 : vector<1x162xf32> to vector<8x162xf32>
    %19 = tpu.concatenate %9, %12, %15, %18 in 0 : vector<8x162xf32>, vector<8x162xf32>, vector<8x162xf32>, vector<8x162xf32> -> vector<32x162xf32>
    %20 = arith.mulf %5, %19 : vector<32x162xf32>
    %cst_7 = arith.constant dense<0.000000e+00> : vector<32xf32>
    %21 = vector.multi_reduction <add>, %20, %cst_7 [1] : vector<32x162xf32> to vector<32xf32>
    %22 = vector.shape_cast %21 : vector<32xf32> to vector<32x1xf32>
    %23 = vector.extract_strided_slice %22 {offsets = [0, 0], sizes = [8, 1], strides = [1, 1]} : vector<32x1xf32> to vector<8x1xf32>
    %24 = vector.extract_strided_slice %22 {offsets = [8, 0], sizes = [8, 1], strides = [1, 1]} : vector<32x1xf32> to vector<8x1xf32>
    %25 = arith.addf %23, %24 : vector<8x1xf32>
    %26 = vector.extract_strided_slice %22 {offsets = [16, 0], sizes = [8, 1], strides = [1, 1]} : vector<32x1xf32> to vector<8x1xf32>
    %27 = arith.addf %25, %26 : vector<8x1xf32>
    %28 = vector.extract_strided_slice %22 {offsets = [24, 0], sizes = [8, 1], strides = [1, 1]} : vector<32x1xf32> to vector<8x1xf32>
    %29 = arith.addf %27, %28 : vector<8x1xf32>
    %cst_8 = arith.constant 0.001953125 : f32
    %30 = vector.broadcast %cst_8 : f32 to vector<8x1xf32>
    %31 = arith.mulf %29, %30 : vector<8x1xf32>
    %32 = tpu.concatenate %31, %31, %31, %31 in 0 : vector<8x1xf32>, vector<8x1xf32>, vector<8x1xf32>, vector<8x1xf32> -> vector<32x1xf32>
    %33 = vector.broadcast %32 : vector<32x1xf32> to vector<32x162xf32>
    %34 = arith.subf %5, %33 : vector<32x162xf32>
    %35 = arith.mulf %34, %19 : vector<32x162xf32>
    %36 = arith.mulf %35, %35 : vector<32x162xf32>
    %cst_9 = arith.constant dense<0.000000e+00> : vector<32xf32>
    %37 = vector.multi_reduction <add>, %36, %cst_9 [1] : vector<32x162xf32> to vector<32xf32>
    %38 = vector.shape_cast %37 : vector<32xf32> to vector<32x1xf32>
    %39 = vector.extract_strided_slice %38 {offsets = [0, 0], sizes = [8, 1], strides = [1, 1]} : vector<32x1xf32> to vector<8x1xf32>
    %40 = vector.extract_strided_slice %38 {offsets = [8, 0], sizes = [8, 1], strides = [1, 1]} : vector<32x1xf32> to vector<8x1xf32>
    %41 = arith.addf %39, %40 : vector<8x1xf32>
    %42 = vector.extract_strided_slice %38 {offsets = [16, 0], sizes = [8, 1], strides = [1, 1]} : vector<32x1xf32> to vector<8x1xf32>
    %43 = arith.addf %41, %42 : vector<8x1xf32>
    %44 = vector.extract_strided_slice %38 {offsets = [24, 0], sizes = [8, 1], strides = [1, 1]} : vector<32x1xf32> to vector<8x1xf32>
    %45 = arith.addf %43, %44 : vector<8x1xf32>
    %cst_10 = arith.constant 0.001953125 : f32
    %46 = vector.broadcast %cst_10 : f32 to vector<8x1xf32>
    %47 = arith.mulf %45, %46 : vector<8x1xf32>
    %c0_11 = arith.constant 0 : index
    %c0_12 = arith.constant 0 : index
    %48 = vector.load %arg3[%c0_11, %c0_12] : memref<8x1xf32, #tpu.memory_space<vmem>>, vector<8x1xf32>
    %cst_13 = arith.constant 9.99999974E-6 : f32
    %49 = vector.broadcast %cst_13 : f32 to vector<8x1xf32>
    %50 = arith.addf %47, %49 : vector<8x1xf32>
    %51 = math.rsqrt %50 : vector<8x1xf32>
    %52 = arith.mulf %48, %51 : vector<8x1xf32>
    %c0_14 = arith.constant 0 : index
    %c0_15 = arith.constant 0 : index
    %53 = vector.load %arg4[%c0_14, %c0_15] : memref<8x1xf32, #tpu.memory_space<vmem>>, vector<8x1xf32>
    %54 = arith.mulf %31, %52 : vector<8x1xf32>
    %55 = arith.subf %53, %54 : vector<8x1xf32>
    %56 = tpu.concatenate %52, %52, %52, %52 in 0 : vector<8x1xf32>, vector<8x1xf32>, vector<8x1xf32>, vector<8x1xf32> -> vector<32x1xf32>
    %57 = tpu.concatenate %55, %55, %55, %55 in 0 : vector<8x1xf32>, vector<8x1xf32>, vector<8x1xf32>, vector<8x1xf32> -> vector<32x1xf32>
    %58 = vector.broadcast %56 : vector<32x1xf32> to vector<32x162xf32>
    %59 = arith.mulf %5, %58 : vector<32x162xf32>
    %60 = vector.broadcast %57 : vector<32x1xf32> to vector<32x162xf32>
    %61 = arith.addf %59, %60 : vector<32x162xf32>
    %cst_16 = arith.constant 0.000000e+00 : f32
    %62 = vector.broadcast %cst_16 : f32 to vector<32x162xf32>
    %63 = arith.maximumf %61, %62 : vector<32x162xf32>
    %64 = arith.mulf %63, %19 : vector<32x162xf32>
    %c0_17 = arith.constant 0 : index
    %c0_18 = arith.constant 0 : index
    %65 = vector.load %arg6[%c0_17, %c0_18] : memref<32x162xf32, #tpu.memory_space<vmem>>, vector<32x162xf32>
    tpu.vector_store %arg6[%c0_17, %c0_18], %64 {strides = array<i32>} : memref<32x162xf32, #tpu.memory_space<vmem>>, vector<32x162xf32>,
    return
  }
}

module attributes {stable_mosaic.version = 11 : i64} {
  func.func @_convt_bn_kernel(%arg0: memref<32x578xf32, #tpu.memory_space<vmem>>, %arg1: memref<16x32xf32, #tpu.memory_space<vmem>>, %arg2: memref<16x1xf32, #tpu.memory_space<vmem>>, %arg3: memref<4x1xf32, #tpu.memory_space<vmem>>, %arg4: memref<4x1xf32, #tpu.memory_space<vmem>>, %arg5: memref<4x578xf32, #tpu.memory_space<vmem>>, %arg6: memref<16x578xf32, #tpu.memory_space<vmem>>) attributes {dimension_semantics = [], scalar_prefetch = 0 : i64, scratch_operands = 0 : i64, tpu.core_type = #tpu.core_type<tc>} {
    %c0 = arith.constant 0 : index
    %c0_0 = arith.constant 0 : index
    %0 = vector.load %arg1[%c0, %c0_0] : memref<16x32xf32, #tpu.memory_space<vmem>>, vector<16x32xf32>
    %c0_1 = arith.constant 0 : index
    %c0_2 = arith.constant 0 : index
    %1 = vector.load %arg0[%c0_1, %c0_2] : memref<32x578xf32, #tpu.memory_space<vmem>>, vector<32x578xf32>
    %cst = arith.constant dense<0.000000e+00> : vector<16x578xf32>
    %2 = tpu.matmul %0, %1, %cst {dimension_numbers = #tpu.dot_dimension_numbers<[1], [0], [0], [1], [0, 0, 1, 1], [], []>} : vector<16x32xf32>, vector<32x578xf32>, vector<16x578xf32> -> vector<16x578xf32>
    %c0_3 = arith.constant 0 : index
    %c0_4 = arith.constant 0 : index
    %3 = vector.load %arg2[%c0_3, %c0_4] : memref<16x1xf32, #tpu.memory_space<vmem>>, vector<16x1xf32>
    %4 = vector.broadcast %3 : vector<16x1xf32> to vector<16x578xf32>
    %5 = arith.addf %2, %4 : vector<16x578xf32>
    %c0_5 = arith.constant 0 : index
    %c0_6 = arith.constant 0 : index
    %6 = vector.load %arg5[%c0_5, %c0_6] : memref<4x578xf32, #tpu.memory_space<vmem>>, vector<4x578xf32>
    %7 = vector.extract_strided_slice %6 {offsets = [0, 0], sizes = [1, 578], strides = [1, 1]} : vector<4x578xf32> to vector<1x578xf32>
    %8 = vector.shape_cast %7 : vector<1x578xf32> to vector<1x578xf32>
    %9 = vector.broadcast %8 : vector<1x578xf32> to vector<4x578xf32>
    %10 = vector.extract_strided_slice %6 {offsets = [1, 0], sizes = [1, 578], strides = [1, 1]} : vector<4x578xf32> to vector<1x578xf32>
    %11 = vector.shape_cast %10 : vector<1x578xf32> to vector<1x578xf32>
    %12 = vector.broadcast %11 : vector<1x578xf32> to vector<4x578xf32>
    %13 = vector.extract_strided_slice %6 {offsets = [2, 0], sizes = [1, 578], strides = [1, 1]} : vector<4x578xf32> to vector<1x578xf32>
    %14 = vector.shape_cast %13 : vector<1x578xf32> to vector<1x578xf32>
    %15 = vector.broadcast %14 : vector<1x578xf32> to vector<4x578xf32>
    %16 = vector.extract_strided_slice %6 {offsets = [3, 0], sizes = [1, 578], strides = [1, 1]} : vector<4x578xf32> to vector<1x578xf32>
    %17 = vector.shape_cast %16 : vector<1x578xf32> to vector<1x578xf32>
    %18 = vector.broadcast %17 : vector<1x578xf32> to vector<4x578xf32>
    %19 = tpu.concatenate %9, %12, %15, %18 in 0 : vector<4x578xf32>, vector<4x578xf32>, vector<4x578xf32>, vector<4x578xf32> -> vector<16x578xf32>
    %20 = arith.mulf %5, %19 : vector<16x578xf32>
    %cst_7 = arith.constant dense<0.000000e+00> : vector<16xf32>
    %21 = vector.multi_reduction <add>, %20, %cst_7 [1] : vector<16x578xf32> to vector<16xf32>
    %22 = vector.shape_cast %21 : vector<16xf32> to vector<16x1xf32>
    %23 = vector.extract_strided_slice %22 {offsets = [0, 0], sizes = [4, 1], strides = [1, 1]} : vector<16x1xf32> to vector<4x1xf32>
    %24 = vector.extract_strided_slice %22 {offsets = [4, 0], sizes = [4, 1], strides = [1, 1]} : vector<16x1xf32> to vector<4x1xf32>
    %25 = arith.addf %23, %24 : vector<4x1xf32>
    %26 = vector.extract_strided_slice %22 {offsets = [8, 0], sizes = [4, 1], strides = [1, 1]} : vector<16x1xf32> to vector<4x1xf32>
    %27 = arith.addf %25, %26 : vector<4x1xf32>
    %28 = vector.extract_strided_slice %22 {offsets = [12, 0], sizes = [4, 1], strides = [1, 1]} : vector<16x1xf32> to vector<4x1xf32>
    %29 = arith.addf %27, %28 : vector<4x1xf32>
    %cst_8 = arith.constant 4.8828125E-4 : f32
    %30 = vector.broadcast %cst_8 : f32 to vector<4x1xf32>
    %31 = arith.mulf %29, %30 : vector<4x1xf32>
    %32 = tpu.concatenate %31, %31, %31, %31 in 0 : vector<4x1xf32>, vector<4x1xf32>, vector<4x1xf32>, vector<4x1xf32> -> vector<16x1xf32>
    %33 = vector.broadcast %32 : vector<16x1xf32> to vector<16x578xf32>
    %34 = arith.subf %5, %33 : vector<16x578xf32>
    %35 = arith.mulf %34, %19 : vector<16x578xf32>
    %36 = arith.mulf %35, %35 : vector<16x578xf32>
    %cst_9 = arith.constant dense<0.000000e+00> : vector<16xf32>
    %37 = vector.multi_reduction <add>, %36, %cst_9 [1] : vector<16x578xf32> to vector<16xf32>
    %38 = vector.shape_cast %37 : vector<16xf32> to vector<16x1xf32>
    %39 = vector.extract_strided_slice %38 {offsets = [0, 0], sizes = [4, 1], strides = [1, 1]} : vector<16x1xf32> to vector<4x1xf32>
    %40 = vector.extract_strided_slice %38 {offsets = [4, 0], sizes = [4, 1], strides = [1, 1]} : vector<16x1xf32> to vector<4x1xf32>
    %41 = arith.addf %39, %40 : vector<4x1xf32>
    %42 = vector.extract_strided_slice %38 {offsets = [8, 0], sizes = [4, 1], strides = [1, 1]} : vector<16x1xf32> to vector<4x1xf32>
    %43 = arith.addf %41, %42 : vector<4x1xf32>
    %44 = vector.extract_strided_slice %38 {offsets = [12, 0], sizes = [4, 1], strides = [1, 1]} : vector<16x1xf32> to vector<4x1xf32>
    %45 = arith.addf %43, %44 : vector<4x1xf32>
    %cst_10 = arith.constant 4.8828125E-4 : f32
    %46 = vector.broadcast %cst_10 : f32 to vector<4x1xf32>
    %47 = arith.mulf %45, %46 : vector<4x1xf32>
    %c0_11 = arith.constant 0 : index
    %c0_12 = arith.constant 0 : index
    %48 = vector.load %arg3[%c0_11, %c0_12] : memref<4x1xf32, #tpu.memory_space<vmem>>, vector<4x1xf32>
    %cst_13 = arith.constant 9.99999974E-6 : f32
    %49 = vector.broadcast %cst_13 : f32 to vector<4x1xf32>
    %50 = arith.addf %47, %49 : vector<4x1xf32>
    %51 = math.rsqrt %50 : vector<4x1xf32>
    %52 = arith.mulf %48, %51 : vector<4x1xf32>
    %c0_14 = arith.constant 0 : index
    %c0_15 = arith.constant 0 : index
    %53 = vector.load %arg4[%c0_14, %c0_15] : memref<4x1xf32, #tpu.memory_space<vmem>>, vector<4x1xf32>
    %54 = arith.mulf %31, %52 : vector<4x1xf32>
    %55 = arith.subf %53, %54 : vector<4x1xf32>
    %56 = tpu.concatenate %52, %52, %52, %52 in 0 : vector<4x1xf32>, vector<4x1xf32>, vector<4x1xf32>, vector<4x1xf32> -> vector<16x1xf32>
    %57 = tpu.concatenate %55, %55, %55, %55 in 0 : vector<4x1xf32>, vector<4x1xf32>, vector<4x1xf32>, vector<4x1xf32> -> vector<16x1xf32>
    %58 = vector.broadcast %56 : vector<16x1xf32> to vector<16x578xf32>
    %59 = arith.mulf %5, %58 : vector<16x578xf32>
    %60 = vector.broadcast %57 : vector<16x1xf32> to vector<16x578xf32>
    %61 = arith.addf %59, %60 : vector<16x578xf32>
    %cst_16 = arith.constant 0.000000e+00 : f32
    %62 = vector.broadcast %cst_16 : f32 to vector<16x578xf32>
    %63 = arith.maximumf %61, %62 : vector<16x578xf32>
    %64 = arith.mulf %63, %19 : vector<16x578xf32>
    %c0_17 = arith.constant 0 : index
    %c0_18 = arith.constant 0 : index
    %65 = vector.load %arg6[%c0_17, %c0_18] : memref<16x578xf32, #tpu.memory_space<vmem>>, vector<16x578xf32>
    tpu.vector_store %arg6[%c0_17, %c0_18], %64 {strides = array<i32>} : memref<16x578xf32, #tpu.memory_space<vmem>>, vector<16x578xf32>,
    return
  }
}

module attributes {stable_mosaic.version = 11 : i64} {
  func.func @_convt_kernel(%arg0: memref<16x2178xf32, #tpu.memory_space<vmem>>, %arg1: memref<12x16xf32, #tpu.memory_space<vmem>>, %arg2: memref<12x1xf32, #tpu.memory_space<vmem>>, %arg3: memref<12x2178xf32, #tpu.memory_space<vmem>>) attributes {dimension_semantics = [], scalar_prefetch = 0 : i64, scratch_operands = 0 : i64, tpu.core_type = #tpu.core_type<tc>} {
    %c0 = arith.constant 0 : index
    %c0_0 = arith.constant 0 : index
    %0 = vector.load %arg1[%c0, %c0_0] : memref<12x16xf32, #tpu.memory_space<vmem>>, vector<12x16xf32>
    %c0_1 = arith.constant 0 : index
    %c0_2 = arith.constant 0 : index
    %1 = vector.load %arg0[%c0_1, %c0_2] : memref<16x2178xf32, #tpu.memory_space<vmem>>, vector<16x2178xf32>
    %cst = arith.constant dense<0.000000e+00> : vector<12x2178xf32>
    %2 = tpu.matmul %0, %1, %cst {dimension_numbers = #tpu.dot_dimension_numbers<[1], [0], [0], [1], [0, 0, 1, 1], [], []>} : vector<12x16xf32>, vector<16x2178xf32>, vector<12x2178xf32> -> vector<12x2178xf32>
    %c0_3 = arith.constant 0 : index
    %c0_4 = arith.constant 0 : index
    %3 = vector.load %arg2[%c0_3, %c0_4] : memref<12x1xf32, #tpu.memory_space<vmem>>, vector<12x1xf32>
    %4 = vector.broadcast %3 : vector<12x1xf32> to vector<12x2178xf32>
    %5 = arith.addf %2, %4 : vector<12x2178xf32>
    %cst_5 = arith.constant 0.000000e+00 : f32
    %6 = vector.broadcast %cst_5 : f32 to vector<12x2178xf32>
    %7 = arith.maximumf %5, %6 : vector<12x2178xf32>
    %c0_6 = arith.constant 0 : index
    %c0_7 = arith.constant 0 : index
    %8 = vector.load %arg3[%c0_6, %c0_7] : memref<12x2178xf32, #tpu.memory_space<vmem>>, vector<12x2178xf32>
    tpu.vector_store %arg3[%c0_6, %c0_7], %7 {strides = array<i32>} : memref<12x2178xf32, #tpu.memory_space<vmem>>, vector<12x2178xf32>,
    return
  }
}

</mosaic_0001>

<bundles_post_ra>
// kernel: decoder_forward.5
= control target key start
LH: loop header
LB: loop body
LE: loop exit
PB: predicated region body
PF: predicated region fallthrough
CT: control target
= control target key end

     0   :  { %10 = vsyncpa [#allocation3], 0  ;;  %s749_s0 = inlined_call_operand.hbm [shape: f32[2,256], index: 0, kind: input, shape index: {}]   ;;  %s750_s1 = inlined_call_operand.hbm [shape: f32[256,256], index: 1, kind: input, shape index: {}]   ;;  %s751_s2 = inlined_call_operand.hbm [shape: f32[1,256], index: 2, kind: input, shape index: {}]   ;;  %s752_s3 = inlined_call_operand.hbm [shape: f32[256,512], index: 3, kind: input, shape index: {}]   ;;  %s753_s4 = inlined_call_operand.hbm [shape: f32[1,512], index: 4, kind: input, shape index: {}]   ;;  %s754_s5 = inlined_call_operand.vmem [shape: f32[2,512], index: 5, kind: output, shape index: {}]  }
   0x1   :  { %11 = vsyncpa [#allocation5], 0 }
   0x2   :  { %12 = vsyncpa [#allocation8], 0  ;;  %s686_s18 = smov [#allocation4]  }
   0x3   :  { %s28_s19 = sshll.u32 %s686_s18, 4  ;;  %s29_s19 = int_to_ptr.vmem [resolvable:$true] %s28_s19 }
   0x4   :  { %s588_s20 = scalar_lea.vmem %s29_s19, 8192  ;;  %p593_p1 = scmp.lt.s32.totalorder %s29_s19, %s29_s19 }
   0x5   :  { %p589_p0 = scmp.ne.s32.totalorder %s29_s19, %s588_s20  ;;  %p594_p2 = scmp.lt.s32.totalorder %s588_s20, %s588_s20 }
   0x7   :  { %p595_p3 = por %p594_p2, %p593_p1 }
   0x9   :  { %p596_p4 = pnand %p595_p3, %p589_p0 }
   0xb   :  { %599 = shalt.err (!%p596_p4)
}
   0xc   :  { %s687_s21 = smov 256   ;;  %s688_s22 = smov 16  }
   0xd   :  { %34 = dma.hbm_to_vmem [thread:$0]  %s750_s1, 8192, %s29_s19, [#allocation5], %s687_s21, %s687_s21, %s688_s22  }
   0xe   :  { %s689_s25 = smov [#allocation7]  }
   0xf   :  { %s50_s26 = sshll.u32 %s689_s25, 4  ;;  %s51_s26 = int_to_ptr.vmem [resolvable:$true] %s50_s26 }
  0x10   :  { %s608_s27 = scalar_lea.vmem %s51_s26, 16384  ;;  %p613_p6 = scmp.lt.s32.totalorder %s51_s26, %s51_s26 }
  0x11   :  { %p609_p5 = scmp.ne.s32.totalorder %s51_s26, %s608_s27  ;;  %p614_p7 = scmp.lt.s32.totalorder %s608_s27, %s608_s27 }
  0x13   :  { %p615_p8 = por %p614_p7, %p613_p6 }
  0x15   :  { %p616_p9 = pnand %p615_p8, %p609_p5 }
  0x17   :  { %619 = shalt.err (!%p616_p9)
}
  0x18   :  { %s690_s28 = smov 512   ;;  %s691_s29 = smov 32  }
  0x19   :  { %56 = dma.hbm_to_vmem [thread:$0]  %s752_s3, 16384, %s51_s26, [#allocation8], %s690_s28, %s690_s28, %s691_s29  }
  0x1a   :  { %s692_s7 = smov [#allocation2]   ;;  %s693_s9 = smov [#allocation6]  }
  0x1b   :  { %s19_s8 = sshll.u32 %s692_s7, 4  ;;  %s41_s1 = sshll.u32 %s693_s9, 4  ;;  %s20_s8 = int_to_ptr.vmem [resolvable:$true] %s19_s8  ;;  %s42_s1 = int_to_ptr.vmem [resolvable:$true] %s41_s1 }
  0x1c   :  { %s628_s10 = scalar_lea.vmem %s20_s8, 64  ;;  %p633_p11 = scmp.lt.s32.totalorder %s20_s8, %s20_s8 }
  0x1d   :  { %p629_p10 = scmp.ne.s32.totalorder %s20_s8, %s628_s10  ;;  %p634_p12 = scmp.lt.s32.totalorder %s628_s10, %s628_s10 }
  0x1f   :  { %p635_p13 = por %p634_p12, %p633_p11 }
  0x21   :  { %p636_p0 = pnand %p635_p13, %p629_p10 }
  0x23   :  { %639 = shalt.err (!%p636_p0)
}
  0x24   :  { %22 = dma.hbm_to_vmem [thread:$0]  %s749_s0, 64, %s20_s8, [#allocation3]  }
  0x25   :  { %s648_s13 = scalar_lea.vmem %s42_s1, 32  ;;  %p653_p2 = scmp.lt.s32.totalorder %s42_s1, %s42_s1 }
  0x26   :  { %p649_p1 = scmp.ne.s32.totalorder %s42_s1, %s648_s13  ;;  %p654_p3 = scmp.lt.s32.totalorder %s648_s13, %s648_s13 }
  0x28   :  { %p655_p4 = por %p654_p3, %p653_p2 }
  0x2a   :  { %p656_p5 = pnand %p655_p4, %p649_p1 }
  0x2c   :  { %659 = shalt.err (!%p656_p5)
}
  0x2d   :  { %44 = dma.hbm_to_vmem [thread:$0]  %s751_s2, 32, %s42_s1, [#allocation5]  }
  0x2e   :  { %s694_s15 = smov [#allocation9]  }
  0x2f   :  { %s63_s16 = sshll.u32 %s694_s15, 4  ;;  %s64_s16 = int_to_ptr.vmem [resolvable:$true] %s63_s16 }
  0x30   :  { %s668_s17 = scalar_lea.vmem %s64_s16, 64  ;;  %p673_p7 = scmp.lt.s32.totalorder %s64_s16, %s64_s16 }
  0x31   :  { %p669_p6 = scmp.ne.s32.totalorder %s64_s16, %s668_s17  ;;  %p674_p8 = scmp.lt.s32.totalorder %s668_s17, %s668_s17 }
  0x33   :  { %p675_p9 = por %p674_p8, %p673_p7 }
  0x35   :  { %p676_p10 = pnand %p675_p9, %p669_p6 }
  0x37   :  { %679 = shalt.err (!%p676_p10)
}
  0x38   :  { %66 = dma.hbm_to_vmem [thread:$0]  %s753_s4, 64, %s64_s16, [#allocation8]  }
  0x39   :  { %680 = dma.done.wait [#allocation3], 64  }
  0x3a   :  { %681 = vsyncadd [#allocation3], 4294967232 }
  0x3b   :  { %682 = dma.done.wait [#allocation5], 8224  }
  0x3c   :  { %683 = vsyncadd [#allocation5], 4294959072 }
  0x3d   :  { %684 = dma.done.wait [#allocation8], 16448  }
  0x3e   :  { %685 = vsyncadd [#allocation8], 4294950848  ;;  %v114_v0 = vld [vmem:[#allocation4 + $0xf8] sm:$0xff]  ;;  %v113_v1 = vld [vmem:[#allocation4 + $0xf0] sm:$0xff] }
  0x3f   :  { %v112_v2 = vld [vmem:[#allocation4 + $0xe8] sm:$0xff]  ;;  %170 = vmatprep.subr.mxu0 %v114_v0  ;;  %v111_v3 = vld [vmem:[#allocation4 + $0xe0] sm:$0xff]  ;;  %v110_v4 = vld [vmem:[#allocation4 + $0xd8] sm:$0xff] }
  0x40   :  { %171 = vmatpush1.msra.mxu0 %v113_v1  ;;  %v109_v5 = vld [vmem:[#allocation4 + $0xd0] sm:$0xff]  ;;  %v108_v6 = vld [vmem:[#allocation4 + $0xc8] sm:$0xff]  ;;  %v107_v7 = vld [vmem:[#allocation4 + $0xc0] sm:$0xff] }
  0x41   :  { %172 = vmatprep.subr.mxu0 %v112_v2  ;;  %v106_v8 = vld [vmem:[#allocation4 + $0xb8] sm:$0xff]  ;;  %v105_v9 = vld [vmem:[#allocation4 + $0xb0] sm:$0xff]  ;;  %v104_v10 = vld [vmem:[#allocation4 + $0xa8] sm:$0xff] }
  0x42   :  { %173 = vmatpush1.msra.mxu0 %v111_v3  ;;  %v103_v11 = vld [vmem:[#allocation4 + $0xa0] sm:$0xff]  ;;  %v102_v12 = vld [vmem:[#allocation4 + $0x98] sm:$0xff]  ;;  %v101_v13 = vld [vmem:[#allocation4 + $0x90] sm:$0xff] }
  0x43   :  { %174 = vmatprep.subr.mxu0 %v110_v4  ;;  %v100_v14 = vld [vmem:[#allocation4 + $0x88] sm:$0xff]  ;;  %v99_v15 = vld [vmem:[#allocation4 + $0x80] sm:$0xff]  ;;  %v98_v16 = vld [vmem:[#allocation4 + $0x78] sm:$0xff] }
  0x44   :  { %175 = vmatpush1.msra.mxu0 %v109_v5  ;;  %v97_v17 = vld [vmem:[#allocation4 + $0x70] sm:$0xff]  ;;  %v96_v18 = vld [vmem:[#allocation4 + $0x68] sm:$0xff]  ;;  %v95_v19 = vld [vmem:[#allocation4 + $0x60] sm:$0xff] }
  0x45   :  { %176 = vmatprep.subr.mxu0 %v108_v6  ;;  %v94_v20 = vld [vmem:[#allocation4 + $0x58] sm:$0xff]  ;;  %v93_v21 = vld [vmem:[#allocation4 + $0x50] sm:$0xff]  ;;  %v92_v22 = vld [vmem:[#allocation4 + $0x48] sm:$0xff] }
  0x46   :  { %177 = vmatpush1.msra.mxu0 %v107_v7  ;;  %v91_v23 = vld [vmem:[#allocation4 + $0x40] sm:$0xff]  ;;  %v741_v24 = vld.sshfl [vmem:[#allocation2] sm:$0x33 pattern:$0x76325410]  ;;  %v304_v25 = vld [vmem:[#allocation7 + $0x1e8] sm:$0xff] }
  0x47   :  { %178 = vmatprep.subr.mxu0 %v106_v8  ;;  %v90_v26 = vld [vmem:[#allocation4 + $0x38] sm:$0xff]  ;;  %v167_v27 = vcombine.high %v741_v24, %v741_v24  ;;  %393 = vmatprep.subr.mxu1 %v304_v25  ;;  %v303_v28 = vld [vmem:[#allocation7 + $0x1e0] sm:$0xff]  ;;  %v89_v29 = vld [vmem:[#allocation4 + $0x30] sm:$0xff] }
  0x48   :  { %179 = vmatpush1.msra.mxu0 %v105_v9  ;;  %394 = vmatpush1.msra.mxu1 %v303_v28  ;;  %v300_v30 = vld [vmem:[#allocation7 + $0x1c8] sm:$0xff]  ;;  %v299_v31 = vld [vmem:[#allocation7 + $0x1c0] sm:$0xff]  ;;  %v86_v36 = vld [vmem:[#allocation4 + $0x18] sm:$0xff] }
  0x49   :  { %180 = vmatprep.subr.mxu0 %v104_v10  ;;  %v88_v32 = vld [vmem:[#allocation4 + $0x28] sm:$0xff]  ;;  %234 = vmatprep.mubr.f32.mxu0 %v167_v27  ;;  %v87_v34 = vld [vmem:[#allocation4 + $0x20] sm:$0xff]  ;;  %v85_v38 = vld [vmem:[#allocation4 + $0x10] sm:$0xff] }
  0x4a   :  { %181 = vmatpush1.msra.mxu0 %v103_v11  ;;  %v296_v33 = vld [vmem:[#allocation7 + $0x1a8] sm:$0xff]  ;;  %395 = vmatprep.subr.mxu1 %v300_v30  ;;  %v295_v35 = vld [vmem:[#allocation7 + $0x1a0] sm:$0xff]  ;;  %v146_v44 = vld [vmem:[#allocation4 + $0x1f8] sm:$0xff] }
  0x4b   :  { %182 = vmatprep.subr.mxu0 %v102_v12  ;;  %396 = vmatpush1.msra.mxu1 %v299_v31  ;;  %v292_v37 = vld [vmem:[#allocation7 + $0x188] sm:$0xff]  ;;  %v291_v39 = vld [vmem:[#allocation7 + $0x180] sm:$0xff]  ;;  %v142_v52 = vld [vmem:[#allocation4 + $0x1d8] sm:$0xff] }
  0x4c   :  { %183 = vmatpush1.msra.mxu0 %v101_v13  ;;  %397 = vmatprep.subr.mxu1 %v296_v33  ;;  %v84_v40 = vld [vmem:[#allocation4 + $0x8] sm:$0xff]  ;;  %v83_v42 = vld [vmem:[#allocation4] sm:$0xff]  ;;  %v145_v46 = vld [vmem:[#allocation4 + $0x1f0] sm:$0xff] }
  0x4d   :  { %184 = vmatprep.subr.mxu0 %v100_v14  ;;  %398 = vmatpush1.msra.mxu1 %v295_v35  ;;  %v288_v41 = vld [vmem:[#allocation7 + $0x168] sm:$0xff]  ;;  %v287_v43 = vld [vmem:[#allocation7 + $0x160] sm:$0xff]  ;;  %v138_v60 = vld [vmem:[#allocation4 + $0x1b8] sm:$0xff] }
  0x4e   :  { %185 = vmatpush1.msra.mxu0 %v99_v15  ;;  %399 = vmatprep.subr.mxu1 %v292_v37  ;;  %v284_v45 = vld [vmem:[#allocation7 + $0x148] sm:$0xff]  ;;  %v283_v47 = vld [vmem:[#allocation7 + $0x140] sm:$0xff]  ;;  %v134_v4 = vld [vmem:[#allocation4 + $0x198] sm:$0xff] }
  0x4f   :  { %186 = vmatprep.subr.mxu0 %v98_v16  ;;  %400 = vmatpush1.msra.mxu1 %v291_v39  ;;  %v144_v48 = vld [vmem:[#allocation4 + $0x1e8] sm:$0xff]  ;;  %v143_v50 = vld [vmem:[#allocation4 + $0x1e0] sm:$0xff]  ;;  %v141_v54 = vld [vmem:[#allocation4 + $0x1d0] sm:$0xff] }
  0x50   :  { %187 = vmatpush1.msra.mxu0 %v97_v17  ;;  %401 = vmatprep.subr.mxu1 %v288_v41  ;;  %v280_v49 = vld [vmem:[#allocation7 + $0x128] sm:$0xff]  ;;  %v279_v51 = vld [vmem:[#allocation7 + $0x120] sm:$0xff]  ;;  %v130_v12 = vld [vmem:[#allocation4 + $0x178] sm:$0xff] }
  0x51   :  { %188 = vmatprep.subr.mxu0 %v96_v18  ;;  %402 = vmatpush1.msra.mxu1 %v287_v43  ;;  %v276_v53 = vld [vmem:[#allocation7 + $0x108] sm:$0xff]  ;;  %v275_v55 = vld [vmem:[#allocation7 + $0x100] sm:$0xff]  ;;  %v118_v37 = vld [vmem:[#allocation4 + $0x118] sm:$0xff] }
  0x52   :  { %189 = vmatpush1.msra.mxu0 %v95_v19  ;;  %403 = vmatprep.subr.mxu1 %v284_v45  ;;  %v140_v56 = vld [vmem:[#allocation4 + $0x1c8] sm:$0xff]  ;;  %v139_v58 = vld [vmem:[#allocation4 + $0x1c0] sm:$0xff]  ;;  %v137_v62 = vld [vmem:[#allocation4 + $0x1b0] sm:$0xff] }
  0x53   :  { %190 = vmatprep.subr.mxu0 %v94_v20  ;;  %404 = vmatpush1.msra.mxu1 %v283_v47  ;;  %v272_v57 = vld [vmem:[#allocation7 + $0xe8] sm:$0xff]  ;;  %v271_v59 = vld [vmem:[#allocation7 + $0xe0] sm:$0xff]  ;;  %v126_v20 = vld [vmem:[#allocation4 + $0x158] sm:$0xff] }
  0x54   :  { %191 = vmatpush1.msra.mxu0 %v93_v21  ;;  %405 = vmatprep.subr.mxu1 %v280_v49  ;;  %v268_v61 = vld [vmem:[#allocation7 + $0xc8] sm:$0xff]  ;;  %v267_v63 = vld [vmem:[#allocation7 + $0xc0] sm:$0xff]  ;;  %v306_v45 = vld [vmem:[#allocation7 + $0x1f8] sm:$0xff] }
  0x55   :  { %192 = vmatprep.subr.mxu0 %v92_v22  ;;  %406 = vmatpush1.msra.mxu1 %v279_v51  ;;  %v136_v0 = vld [vmem:[#allocation4 + $0x1a8] sm:$0xff]  ;;  %v135_v2 = vld [vmem:[#allocation4 + $0x1a0] sm:$0xff]  ;;  %v133_v6 = vld [vmem:[#allocation4 + $0x190] sm:$0xff] }
  0x56   :  { %193 = vmatpush1.msra.mxu0 %v91_v23  ;;  %407 = vmatprep.subr.mxu1 %v276_v53  ;;  %v264_v1 = vld [vmem:[#allocation7 + $0xa8] sm:$0xff]  ;;  %v263_v3 = vld [vmem:[#allocation7 + $0xa0] sm:$0xff] }
  0x57   :  { %194 = vmatprep.subr.mxu0 %v90_v26  ;;  %408 = vmatpush1.msra.mxu1 %v275_v55  ;;  %v260_v5 = vld [vmem:[#allocation7 + $0x88] sm:$0xff]  ;;  %v259_v7 = vld [vmem:[#allocation7 + $0x80] sm:$0xff] }
  0x58   :  { %195 = vmatpush1.msra.mxu0 %v89_v29  ;;  %409 = vmatprep.subr.mxu1 %v272_v57  ;;  %v132_v8 = vld [vmem:[#allocation4 + $0x188] sm:$0xff]  ;;  %v131_v10 = vld [vmem:[#allocation4 + $0x180] sm:$0xff]  ;;  %v129_v14 = vld [vmem:[#allocation4 + $0x170] sm:$0xff] }
  0x59   :  { %196 = vmatprep.subr.mxu0 %v88_v32  ;;  %410 = vmatpush1.msra.mxu1 %v271_v59  ;;  %v256_v9 = vld [vmem:[#allocation7 + $0x68] sm:$0xff]  ;;  %v255_v11 = vld [vmem:[#allocation7 + $0x60] sm:$0xff]  ;;  %v122_v29 = vld [vmem:[#allocation4 + $0x138] sm:$0xff] }
  0x5a   :  { %197 = vmatpush1.msra.mxu0 %v87_v34  ;;  %411 = vmatprep.subr.mxu1 %v268_v61  ;;  %v252_v13 = vld [vmem:[#allocation7 + $0x48] sm:$0xff]  ;;  %v251_v15 = vld [vmem:[#allocation7 + $0x40] sm:$0xff]  ;;  %v289_v61 = vld [vmem:[#allocation7 + $0x170] sm:$0xff] }
  0x5b   :  { %198 = vmatprep.subr.mxu0 %v86_v36  ;;  %412 = vmatpush1.msra.mxu1 %v267_v63  ;;  %v128_v16 = vld [vmem:[#allocation4 + $0x168] sm:$0xff]  ;;  %v127_v18 = vld [vmem:[#allocation4 + $0x160] sm:$0xff]  ;;  %v125_v22 = vld [vmem:[#allocation4 + $0x150] sm:$0xff] }
  0x5c   :  { %199 = vmatpush1.msra.mxu0 %v85_v38  ;;  %413 = vmatprep.subr.mxu1 %v264_v1  ;;  %v248_v17 = vld [vmem:[#allocation7 + $0x28] sm:$0xff]  ;;  %v247_v19 = vld [vmem:[#allocation7 + $0x20] sm:$0xff]  ;;  %v286_v63 = vld [vmem:[#allocation7 + $0x158] sm:$0xff] }
  0x5d   :  { %200 = vmatprep.subr.mxu0 %v84_v40  ;;  %414 = vmatpush1.msra.mxu1 %v263_v3  ;;  %v244_v21 = vld [vmem:[#allocation7 + $0x8] sm:$0xff]  ;;  %v243_v23 = vld [vmem:[#allocation7] sm:$0xff]  ;;  %v285_v1 = vld [vmem:[#allocation7 + $0x150] sm:$0xff] }
  0x5e   :  { %201 = vmatpush1.msra.mxu0 %v83_v42  ;;  %415 = vmatprep.subr.mxu1 %v260_v5  ;;  %v124_v25 = vld [vmem:[#allocation4 + $0x148] sm:$0xff]  ;;  %v123_v27 = vld [vmem:[#allocation4 + $0x140] sm:$0xff]  ;;  %v121_v31 = vld [vmem:[#allocation4 + $0x130] sm:$0xff] }
  0x5f   :  { %202 = vmatprep.subr.mxu0 %v146_v44  ;;  %416 = vmatpush1.msra.mxu1 %v259_v7  ;;  %v368_v26 = vld [vmem:[#allocation7 + $0x3e8] sm:$0xff]  ;;  %v367_v28 = vld [vmem:[#allocation7 + $0x3e0] sm:$0xff]  ;;  %v282_v3 = vld [vmem:[#allocation7 + $0x138] sm:$0xff] }
  0x60   :  { %203 = vmatpush2.msra.mxu0 %v145_v46  ;;  %417 = vmatprep.subr.mxu1 %v256_v9  ;;  %v364_v30 = vld [vmem:[#allocation7 + $0x3c8] sm:$0xff]  ;;  %v363_v32 = vld [vmem:[#allocation7 + $0x3c0] sm:$0xff]  ;;  %v305_v46 = vld [vmem:[#allocation7 + $0x1f0] sm:$0xff] }
  0x61   :  { %204 = vmatprep.subr.mxu0 %v144_v48  ;;  %418 = vmatpush1.msra.mxu1 %v255_v11  ;;  %v120_v33 = vld [vmem:[#allocation4 + $0x128] sm:$0xff]  ;;  %v119_v35 = vld [vmem:[#allocation4 + $0x120] sm:$0xff]  ;;  %v117_v39 = vld [vmem:[#allocation4 + $0x110] sm:$0xff] }
  0x62   :  { %205 = vmatpush2.msra.mxu0 %v143_v50  ;;  %419 = vmatprep.subr.mxu1 %v252_v13  ;;  %v360_v34 = vld [vmem:[#allocation7 + $0x3a8] sm:$0xff]  ;;  %v359_v36 = vld [vmem:[#allocation7 + $0x3a0] sm:$0xff]  ;;  %v302_v48 = vld [vmem:[#allocation7 + $0x1d8] sm:$0xff] }
  0x63   :  { %206 = vmatprep.subr.mxu0 %v142_v52  ;;  %420 = vmatpush1.msra.mxu1 %v251_v15  ;;  %v356_v38 = vld [vmem:[#allocation7 + $0x388] sm:$0xff]  ;;  %v355_v40 = vld [vmem:[#allocation7 + $0x380] sm:$0xff]  ;;  %v301_v50 = vld [vmem:[#allocation7 + $0x1d0] sm:$0xff] }
  0x64   :  { %207 = vmatpush2.msra.mxu0 %v141_v54  ;;  %421 = vmatprep.subr.mxu1 %v248_v17  ;;  %v116_v41 = vld [vmem:[#allocation4 + $0x108] sm:$0xff]  ;;  %v115_v43 = vld [vmem:[#allocation4 + $0x100] sm:$0xff]  ;;  %v297_v54 = vld [vmem:[#allocation7 + $0x1b0] sm:$0xff] }
  0x65   :  { %208 = vmatprep.subr.mxu0 %v140_v56  ;;  %422 = vmatpush1.msra.mxu1 %v247_v19  ;;  %v352_v42 = vld [vmem:[#allocation7 + $0x368] sm:$0xff]  ;;  %v351_v44 = vld [vmem:[#allocation7 + $0x360] sm:$0xff]  ;;  %v298_v52 = vld [vmem:[#allocation7 + $0x1b8] sm:$0xff] }
  0x66   :  { %209 = vmatpush2.msra.mxu0 %v139_v58  ;;  %423 = vmatprep.subr.mxu1 %v244_v21  ;;  %v348_v47 = vld [vmem:[#allocation7 + $0x348] sm:$0xff]  ;;  %v347_v49 = vld [vmem:[#allocation7 + $0x340] sm:$0xff]  ;;  %v294_v56 = vld [vmem:[#allocation7 + $0x198] sm:$0xff] }
  0x67   :  { %210 = vmatprep.subr.mxu0 %v138_v60  ;;  %424 = vmatpush1.msra.mxu1 %v243_v23  ;;  %v344_v51 = vld [vmem:[#allocation7 + $0x328] sm:$0xff]  ;;  %v343_v53 = vld [vmem:[#allocation7 + $0x320] sm:$0xff]  ;;  %v293_v58 = vld [vmem:[#allocation7 + $0x190] sm:$0xff] }
  0x68   :  { %211 = vmatpush2.msra.mxu0 %v137_v62  ;;  %425 = vmatprep.subr.mxu1 %v368_v26  ;;  %v340_v55 = vld [vmem:[#allocation7 + $0x308] sm:$0xff]  ;;  %v339_v57 = vld [vmem:[#allocation7 + $0x300] sm:$0xff]  ;;  %v281_v5 = vld [vmem:[#allocation7 + $0x130] sm:$0xff] }
  0x69   :  { %212 = vmatprep.subr.mxu0 %v136_v0  ;;  %426 = vmatpush2.msra.mxu1 %v367_v28  ;;  %v336_v59 = vld [vmem:[#allocation7 + $0x2e8] sm:$0xff]  ;;  %v335_v60 = vld [vmem:[#allocation7 + $0x2e0] sm:$0xff]  ;;  %v278_v7 = vld [vmem:[#allocation7 + $0x118] sm:$0xff] }
  0x6a   :  { %213 = vmatpush2.msra.mxu0 %v135_v2  ;;  %427 = vmatprep.subr.mxu1 %v364_v30  ;;  %v332_v62 = vld [vmem:[#allocation7 + $0x2c8] sm:$0xff]  ;;  %v331_v0 = vld [vmem:[#allocation7 + $0x2c0] sm:$0xff]  ;;  %v277_v9 = vld [vmem:[#allocation7 + $0x110] sm:$0xff] }
  0x6b   :  { %214 = vmatprep.subr.mxu0 %v134_v4  ;;  %428 = vmatpush2.msra.mxu1 %v363_v32  ;;  %v328_v2 = vld [vmem:[#allocation7 + $0x2a8] sm:$0xff]  ;;  %v327_v4 = vld [vmem:[#allocation7 + $0x2a0] sm:$0xff]  ;;  %v273_v11 = vld [vmem:[#allocation7 + $0xf0] sm:$0xff] }
  0x6c   :  { %215 = vmatpush2.msra.mxu0 %v133_v6  ;;  %429 = vmatprep.subr.mxu1 %v360_v34  ;;  %v324_v6 = vld [vmem:[#allocation7 + $0x288] sm:$0xff]  ;;  %v269_v13 = vld [vmem:[#allocation7 + $0xd0] sm:$0xff] }
  0x6d   :  { %216 = vmatprep.subr.mxu0 %v132_v8  ;;  %430 = vmatpush2.msra.mxu1 %v359_v36  ;;  %v323_v8 = vld [vmem:[#allocation7 + $0x280] sm:$0xff]  ;;  %v265_v15 = vld [vmem:[#allocation7 + $0xb0] sm:$0xff] }
  0x6e   :  { %217 = vmatpush2.msra.mxu0 %v131_v10  ;;  %431 = vmatprep.subr.mxu1 %v356_v38  ;;  %v274_v10 = vld [vmem:[#allocation7 + $0xf8] sm:$0xff]  ;;  %v261_v17 = vld [vmem:[#allocation7 + $0x90] sm:$0xff] }
  0x6f   :  { %218 = vmatprep.subr.mxu0 %v130_v12  ;;  %432 = vmatpush2.msra.mxu1 %v355_v40  ;;  %v270_v12 = vld [vmem:[#allocation7 + $0xd8] sm:$0xff]  ;;  %v257_v19 = vld [vmem:[#allocation7 + $0x70] sm:$0xff] }
  0x70   :  { %219 = vmatpush2.msra.mxu0 %v129_v14  ;;  %433 = vmatprep.subr.mxu1 %v352_v42  ;;  %v266_v14 = vld [vmem:[#allocation7 + $0xb8] sm:$0xff]  ;;  %v253_v21 = vld [vmem:[#allocation7 + $0x50] sm:$0xff] }
  0x71   :  { %220 = vmatprep.subr.mxu0 %v128_v16  ;;  %434 = vmatpush2.msra.mxu1 %v351_v44  ;;  %v262_v16 = vld [vmem:[#allocation7 + $0x98] sm:$0xff]  ;;  %v249_v23 = vld [vmem:[#allocation7 + $0x30] sm:$0xff] }
  0x72   :  { %221 = vmatpush2.msra.mxu0 %v127_v18  ;;  %435 = vmatprep.subr.mxu1 %v348_v47  ;;  %v258_v18 = vld [vmem:[#allocation7 + $0x78] sm:$0xff]  ;;  %v245_v26 = vld [vmem:[#allocation7 + $0x10] sm:$0xff] }
  0x73   :  { %222 = vmatprep.subr.mxu0 %v126_v20  ;;  %436 = vmatpush2.msra.mxu1 %v347_v49  ;;  %v254_v20 = vld [vmem:[#allocation7 + $0x58] sm:$0xff]  ;;  %v369_v28 = vld [vmem:[#allocation7 + $0x3f0] sm:$0xff] }
  0x74   :  { %223 = vmatpush2.msra.mxu0 %v125_v22  ;;  %437 = vmatprep.subr.mxu1 %v344_v51  ;;  %v250_v22 = vld [vmem:[#allocation7 + $0x38] sm:$0xff]  ;;  %v365_v30 = vld [vmem:[#allocation7 + $0x3d0] sm:$0xff]  ;;  %v320_v51 = vld [vmem:[#allocation7 + $0x268] sm:$0xff] }
  0x75   :  { %224 = vmatprep.subr.mxu0 %v124_v25  ;;  %438 = vmatpush2.msra.mxu1 %v343_v53  ;;  %v246_v25 = vld [vmem:[#allocation7 + $0x18] sm:$0xff]  ;;  %v361_v32 = vld [vmem:[#allocation7 + $0x3b0] sm:$0xff]  ;;  %v319_v53 = vld [vmem:[#allocation7 + $0x260] sm:$0xff] }
  0x76   :  { %225 = vmatpush2.msra.mxu0 %v123_v27  ;;  %439 = vmatprep.subr.mxu1 %v340_v55  ;;  %v370_v27 = vld [vmem:[#allocation7 + $0x3f8] sm:$0xff]  ;;  %v357_v34 = vld [vmem:[#allocation7 + $0x390] sm:$0xff]  ;;  %v316_v55 = vld [vmem:[#allocation7 + $0x248] sm:$0xff] }
  0x77   :  { %226 = vmatprep.subr.mxu0 %v122_v29  ;;  %440 = vmatpush2.msra.mxu1 %v339_v57  ;;  %v366_v29 = vld [vmem:[#allocation7 + $0x3d8] sm:$0xff]  ;;  %v353_v36 = vld [vmem:[#allocation7 + $0x370] sm:$0xff]  ;;  %v315_v57 = vld [vmem:[#allocation7 + $0x240] sm:$0xff] }
  0x78   :  { %227 = vmatpush2.msra.mxu0 %v121_v31  ;;  %441 = vmatprep.subr.mxu1 %v336_v59  ;;  %v362_v31 = vld [vmem:[#allocation7 + $0x3b8] sm:$0xff]  ;;  %v349_v38 = vld [vmem:[#allocation7 + $0x350] sm:$0xff]  ;;  %v312_v59 = vld [vmem:[#allocation7 + $0x228] sm:$0xff] }
  0x79   :  { %228 = vmatprep.subr.mxu0 %v120_v33  ;;  %442 = vmatpush2.msra.mxu1 %v335_v60  ;;  %v358_v33 = vld [vmem:[#allocation7 + $0x398] sm:$0xff]  ;;  %v345_v40 = vld [vmem:[#allocation7 + $0x330] sm:$0xff]  ;;  %v311_v60 = vld [vmem:[#allocation7 + $0x220] sm:$0xff] }
  0x7a   :  { %229 = vmatpush2.msra.mxu0 %v119_v35  ;;  %443 = vmatprep.subr.mxu1 %v332_v62  ;;  %v354_v35 = vld [vmem:[#allocation7 + $0x378] sm:$0xff]  ;;  %v341_v42 = vld [vmem:[#allocation7 + $0x310] sm:$0xff]  ;;  %v308_v62 = vld [vmem:[#allocation7 + $0x208] sm:$0xff] }
  0x7b   :  { %230 = vmatprep.subr.mxu0 %v118_v37  ;;  %444 = vmatpush2.msra.mxu1 %v331_v0  ;;  %v350_v37 = vld [vmem:[#allocation7 + $0x358] sm:$0xff]  ;;  %v337_v44 = vld [vmem:[#allocation7 + $0x2f0] sm:$0xff]  ;;  %v307_v0 = vld [vmem:[#allocation7 + $0x200] sm:$0xff] }
  0x7c   :  { %231 = vmatpush2.msra.mxu0 %v117_v39  ;;  %445 = vmatprep.subr.mxu1 %v328_v2  ;;  %v346_v39 = vld [vmem:[#allocation7 + $0x338] sm:$0xff]  ;;  %v149_v2 = vlaneseq }
  0x7d   :  { %232 = vmatprep.subr.mxu0 %v116_v41  ;;  %446 = vmatpush2.msra.mxu1 %v327_v4  ;;  %v342_v41 = vld [vmem:[#allocation7 + $0x318] sm:$0xff] }
  0x7e   :  { %233 = vmatpush2.msra.mxu0 %v115_v43  ;;  %447 = vmatprep.subr.mxu1 %v324_v6  ;;  %v338_v43 = vld [vmem:[#allocation7 + $0x2f8] sm:$0xff] }
  0x7f   :  { %235 = vmatmul.mubr.f32.vlgmr.msra.gmra.mxu0 %v741_v24  ;;  %464 = vmatprep.subr.mxu0 %v306_v45  ;;  %v290_v24 = vld [vmem:[#allocation7 + $0x178] sm:$0xff] }
  0x80   :  { %465 = vmatpush1.msra.mxu0 %v305_v46  ;;  %448 = vmatpush2.msra.mxu1 %v323_v8  ;;  %v334_v45 = vld [vmem:[#allocation7 + $0x2d8] sm:$0xff]  ;;  %v333_v46 = vld [vmem:[#allocation7 + $0x2d0] sm:$0xff] }
  0x81   :  { %466 = vmatprep.subr.mxu0 %v302_v48  ;;  %v330_v47 = vld [vmem:[#allocation7 + $0x2b8] sm:$0xff]  ;;  %v329_v48 = vld [vmem:[#allocation7 + $0x2b0] sm:$0xff]  ;;  %449 = vmatprep.subr.mxu1 %v320_v51 }
  0x82   :  { %467 = vmatpush1.msra.mxu0 %v301_v50  ;;  %v326_v49 = vld [vmem:[#allocation7 + $0x298] sm:$0xff]  ;;  %v325_v50 = vld [vmem:[#allocation7 + $0x290] sm:$0xff]  ;;  %450 = vmatpush2.msra.mxu1 %v319_v53 }
  0x83   :  { %468 = vmatprep.subr.mxu0 %v298_v52  ;;  %v322_v52 = vld [vmem:[#allocation7 + $0x278] sm:$0xff]  ;;  %451 = vmatprep.subr.mxu1 %v316_v55 }
  0x84   :  { %469 = vmatpush1.msra.mxu0 %v297_v54  ;;  %v321_v54 = vld [vmem:[#allocation7 + $0x270] sm:$0xff]  ;;  %452 = vmatpush2.msra.mxu1 %v315_v57 }
  0x85   :  { %470 = vmatprep.subr.mxu0 %v294_v56  ;;  %v318_v56 = vld [vmem:[#allocation7 + $0x258] sm:$0xff]  ;;  %453 = vmatprep.subr.mxu1 %v312_v59 }
  0x86   :  { %471 = vmatpush1.msra.mxu0 %v293_v58  ;;  %v317_v58 = vld [vmem:[#allocation7 + $0x250] sm:$0xff]  ;;  %454 = vmatpush2.msra.mxu1 %v311_v60 }
  0x87   :  { %472 = vmatprep.subr.mxu0 %v290_v24  ;;  %v314_v24 = vld [vmem:[#allocation7 + $0x238] sm:$0xff]  ;;  %455 = vmatprep.subr.mxu1 %v308_v62 }
  0x88   :  { %473 = vmatpush1.msra.mxu0 %v289_v61  ;;  %v313_v61 = vld [vmem:[#allocation7 + $0x230] sm:$0xff]  ;;  %456 = vmatpush2.msra.mxu1 %v307_v0 }
  0x89   :  { %474 = vmatprep.subr.mxu0 %v286_v63  ;;  %v310_v63 = vld [vmem:[#allocation7 + $0x218] sm:$0xff] }
  0x8a   :  { %475 = vmatpush1.msra.mxu0 %v285_v1  ;;  %v309_v1 = vld [vmem:[#allocation7 + $0x210] sm:$0xff] }
  0x8b   :  { %476 = vmatprep.subr.mxu0 %v282_v3  ;;  %v150_v3 = vshrl.u32 %v149_v2, 7 }
  0x8c   :  { %477 = vmatpush1.msra.mxu0 %v281_v5  ;;  %v147_v5 = vld [vmem:[#allocation6] sm:$0x3] }
  0x8d   :  { %478 = vmatprep.subr.mxu0 %v278_v7  ;;  %v151_v4 = vsub.s32 0, %v150_v3  ;;  %v155_v6 = vsub.s32 1, %v150_v3 }
  0x8e   :  { %479 = vmatpush1.msra.mxu0 %v277_v9 }
  0x8f   :  { %480 = vmatprep.subr.mxu0 %v274_v10  ;;  %v152_v7 = vrot.slane %v147_v5, %v151_v4  ;;  %v156_v8 = vrot.slane %v147_v5, %v155_v6 }
  0x90   :  { %481 = vmatpush1.msra.mxu0 %v273_v11 }
  0x91   :  { %482 = vmatprep.subr.mxu0 %v270_v12 }
  0x92   :  { %483 = vmatpush1.msra.mxu0 %v269_v13 }
  0x93   :  { %484 = vmatprep.subr.mxu0 %v266_v14 }
  0x94   :  { %485 = vmatpush1.msra.mxu0 %v265_v15  ;;  %v383_v15 = vsub.s32 2, %v150_v3 }
  0x95   :  { %486 = vmatprep.subr.mxu0 %v262_v16  ;;  %v371_v16 = vld [vmem:[#allocation9] sm:$0xf] }
  0x96   :  { %487 = vmatpush1.msra.mxu0 %v261_v17  ;;  %v387_v17 = vsub.s32 3, %v150_v3 }
  0x97   :  { %488 = vmatprep.subr.mxu0 %v258_v18  ;;  %v695_v18 = vmov 1983009808  }
  0x98   :  { %489 = vmatpush1.msra.mxu0 %v257_v19  ;;  %v546_v19 = vunpack.c.l.s4 %v695_v18 }
  0x99   :  { %490 = vmatprep.subr.mxu0 %v254_v20  ;;  %v376_v20 = vrot.slane %v371_v16, %v151_v4 }
  0x9a   :  { %491 = vmatpush1.msra.mxu0 %v253_v21  ;;  %v384_v21 = vrot.slane %v371_v16, %v383_v15 }
  0x9b   :  { %492 = vmatprep.subr.mxu0 %v250_v22  ;;  %v380_v22 = vrot.slane %v371_v16, %v155_v6 }
  0x9c   :  { %493 = vmatpush1.msra.mxu0 %v249_v23  ;;  %v388_v23 = vrot.slane %v371_v16, %v387_v17 }
  0x9d   :  { %494 = vmatprep.subr.mxu0 %v246_v25 }
  0x9e   :  { %495 = vmatpush1.msra.mxu0 %v245_v26 }
  0x9f   :  { %496 = vmatprep.subr.mxu0 %v370_v27  ;;  %v547_v27 = vunpack.c.0.s8 %v546_v19 }
  0xa0   :  { %497 = vmatpush2.msra.mxu0 %v369_v28 }
  0xa1   :  { %498 = vmatprep.subr.mxu0 %v366_v29 }
  0xa2   :  { %499 = vmatpush2.msra.mxu0 %v365_v30 }
  0xa3   :  { %500 = vmatprep.subr.mxu0 %v362_v31 }
  0xa4   :  { %501 = vmatpush2.msra.mxu0 %v361_v32 }
  0xa5   :  { %502 = vmatprep.subr.mxu0 %v358_v33 }
  0xa6   :  { %503 = vmatpush2.msra.mxu0 %v357_v34  ;;  %v550_v34 = vsub.s32 %v547_v27, %v150_v3 }
  0xa7   :  { %504 = vmatprep.subr.mxu0 %v354_v35 }
  0xa8   :  { %505 = vmatpush2.msra.mxu0 %v353_v36 }
  0xa9   :  { %506 = vmatprep.subr.mxu0 %v350_v37 }
  0xaa   :  { %507 = vmatpush2.msra.mxu0 %v349_v38 }
  0xab   :  { %508 = vmatprep.subr.mxu0 %v346_v39 }
  0xac   :  { %509 = vmatpush2.msra.mxu0 %v345_v40 }
  0xad   :  { %510 = vmatprep.subr.mxu0 %v342_v41 }
  0xae   :  { %511 = vmatpush2.msra.mxu0 %v341_v42 }
  0xaf   :  { %512 = vmatprep.subr.mxu0 %v338_v43 }
  0xb0   :  { %513 = vmatpush2.msra.mxu0 %v337_v44 }
  0xb1   :  { %514 = vmatprep.subr.mxu0 %v334_v45 }
  0xb2   :  { %515 = vmatpush2.msra.mxu0 %v333_v46 }
  0xb3   :  { %516 = vmatprep.subr.mxu0 %v330_v47 }
  0xb4   :  { %517 = vmatpush2.msra.mxu0 %v329_v48 }
  0xb5   :  { %518 = vmatprep.subr.mxu0 %v326_v49 }
  0xb6   :  { %519 = vmatpush2.msra.mxu0 %v325_v50 }
  0xb7   :  { %520 = vmatprep.subr.mxu0 %v322_v52 }
  0xb8   :  { %521 = vmatpush2.msra.mxu0 %v321_v54 }
  0xb9   :  { %522 = vmatprep.subr.mxu0 %v318_v56 }
  0xba   :  { %523 = vmatpush2.msra.mxu0 %v317_v58 }
  0xbb   :  { %524 = vmatprep.subr.mxu0 %v314_v24 }
  0xbc   :  { %525 = vmatpush2.msra.mxu0 %v313_v61 }
  0xbd   :  { %526 = vmatprep.subr.mxu0 %v310_v63 }
  0xbe   :  { %527 = vmatpush2.msra.mxu0 %v309_v1 }
 0x13f   :  { %v236_v9 = vpop.f32.mrf.mxu0 }
 0x140   :  { %v237_v10 = vadd.f32 %v236_v9, %v152_v7 }
 0x141   :  { %v238_v11 = vpop.f32.mrf.mxu0 }
 0x142   :  { %v239_v12 = vadd.f32 %v238_v11, %v156_v8  ;;  %v241_v14 = vmax.f32 %v237_v10, 0.0 }
 0x144   :  { %v242_v13 = vmax.f32 %v239_v12, 0.0 }
 0x146   :  { %457 = vmatprep.mubr.f32.mxu1 %v242_v13  ;;  %528 = vmatprep.mubr.f32.mxu0 %v242_v13 }
 0x147   :  { %458 = vmatmul.mubr.f32.vlgmr.msra.gmra.mxu1 %v241_v14  ;;  %529 = vmatmul.mubr.f32.vlgmr.msra.gmra.mxu0 %v241_v14 }
 0x207   :  { %v459_v25 = vpop.f32.mrf.mxu1  ;;  %v530_v26 = vpop.f32.mrf.mxu0 }
 0x208   :  { %v460_v28 = vadd.f32 %v459_v25, %v376_v20  ;;  %v531_v29 = vadd.f32 %v530_v26, %v384_v21 }
 0x209   :  { %v461_v30 = vpop.f32.mrf.mxu1  ;;  %v532_v31 = vpop.f32.mrf.mxu0 }
 0x20a   :  { %v462_v32 = vadd.f32 %v461_v30, %v380_v22  ;;  %v533_v33 = vadd.f32 %v532_v31, %v388_v23  ;;  %v535_v35 = vmax.f32 %v460_v28, 0.0  ;;  %v537_v36 = vmax.f32 %v531_v29, 0.0 }
 0x20c   :  { %v536_v37 = vmax.f32 %v462_v32, 0.0  ;;  %v538_v38 = vmax.f32 %v533_v33, 0.0 }
 0x20e   :  { %v543_v39 = vcombine.low %v535_v35, %v536_v37  ;;  %v544_v40 = vcombine.low %v537_v36, %v538_v38 }
 0x210   :  { %v551_v41 = vrot.slane %v543_v39, %v550_v34  ;;  %v558_v42 = vrot.slane %v544_v40, %v550_v34 }
 0x212   :  { %v559_v43 = vcombine.low %v551_v41, %v558_v42 }
 0x214   :  { %561 = vst [vmem:[%s754_s5] sm:$0xff] %v559_v43 }
 0x215   :  { %566 = vsyncpa [#allocation3], 1 }
 0x216   :  { %567 = vsyncpa [#allocation5], 1 }
 0x217   :  { %568 = vsyncpa [#allocation8], 1 }

// kernel: decoder_forward.6
= control target key start
LH: loop header
LB: loop body
LE: loop exit
PB: predicated region body
PF: predicated region fallthrough
CT: control target
= control target key end

     0   :  { %v509_v2 = vmov 0   ;;  %v201_v35 = vlaneseq  ;;  %vm225_vm0 = vcmask 408576   ;;  %s784_s0 = inlined_call_operand.vmem [shape: f32[128,50], index: 0, kind: input, shape index: {}]   ;;  %s785_s1 = inlined_call_operand.vmem [shape: f32[64,128], index: 1, kind: input, shape index: {}]   ;;  %s786_s2 = inlined_call_operand.vmem [shape: f32[64,1], index: 2, kind: input, shape index: {}]   ;;  %s787_s5 = inlined_call_operand.vmem [shape: f32[4,50], index: 5, kind: input, shape index: {}]   ;;  %s788_s3 = inlined_call_operand.vmem [shape: f32[16,1], index: 3, kind: input, shape index: {}]   ;;  %s789_s4 = inlined_call_operand.vmem [shape: f32[16,1], index: 4, kind: input, shape index: {}]   ;;  %s790_s6 = inlined_call_operand.vmem [shape: f32[64,50], index: 6, kind: output, shape index: {}]  }
   0x1   :  { %v46_v0 = vld [vmem:[%s784_s0 + $0x78] sm:$0xff]  ;;  %v45_v1 = vld [vmem:[%s784_s0 + $0x70] sm:$0xff]  ;;  %504 = vset.pattern.permute.xlu1 %v509_v2  ;;  %503 = vset.pattern.permute.xlu0 %v509_v2  ;;  %v44_v3 = vld [vmem:[%s784_s0 + $0x68] sm:$0xff] }
   0x2   :  { %426 = vmatprep.subr.mxu0 %v46_v0  ;;  %470 = vmatprep.subr.mxu1 %v46_v0  ;;  %v43_v4 = vld [vmem:[%s784_s0 + $0x60] sm:$0xff]  ;;  %v42_v5 = vld [vmem:[%s784_s0 + $0x58] sm:$0xff]  ;;  %v41_v6 = vld [vmem:[%s784_s0 + $0x50] sm:$0xff]  ;;  %v202_v36 = vshrl.u32 %v201_v35, 7 }
   0x3   :  { %427 = vmatpush3.msra.mxu0 %v46_v0  ;;  %486 = vmatpush3.msra.mxu1 %v46_v0  ;;  %v40_v7 = vld [vmem:[%s784_s0 + $0x48] sm:$0xff]  ;;  %v39_v8 = vld [vmem:[%s784_s0 + $0x40] sm:$0xff]  ;;  %v38_v9 = vld [vmem:[%s784_s0 + $0x38] sm:$0xff] }
   0x4   :  { %428 = vmatprep.subr.mxu0 %v45_v1  ;;  %471 = vmatprep.subr.mxu1 %v45_v1  ;;  %v37_v10 = vld [vmem:[%s784_s0 + $0x30] sm:$0xff]  ;;  %v36_v11 = vld [vmem:[%s784_s0 + $0x28] sm:$0xff]  ;;  %v35_v12 = vld [vmem:[%s784_s0 + $0x20] sm:$0xff]  ;;  %v211_v39 = vsub.s32 2, %v202_v36  ;;  %v203_v40 = vsub.s32 0, %v202_v36  ;;  %v207_v50 = vsub.s32 1, %v202_v36 }
   0x5   :  { %429 = vmatpush3.msra.mxu0 %v45_v1  ;;  %487 = vmatpush3.msra.mxu1 %v45_v1  ;;  %v34_v13 = vld [vmem:[%s784_s0 + $0x18] sm:$0xff]  ;;  %v33_v14 = vld [vmem:[%s784_s0 + $0x10] sm:$0xff]  ;;  %v32_v15 = vld [vmem:[%s784_s0 + $0x8] sm:$0xff]  ;;  %v215_v53 = vsub.s32 3, %v202_v36 }
   0x6   :  { %430 = vmatprep.subr.mxu0 %v44_v3  ;;  %472 = vmatprep.subr.mxu1 %v44_v3  ;;  %v31_v16 = vld [vmem:[%s784_s0] sm:$0xff]  ;;  %v24_v19 = vld [vmem:[%s785_s1 + $0x8] sm:$0xff]  ;;  %v25_v21 = vld [vmem:[%s785_s1 + $0x10] sm:$0xff] }
   0x7   :  { %431 = vmatpush3.msra.mxu0 %v44_v3  ;;  %488 = vmatpush3.msra.mxu1 %v44_v3  ;;  %v23_v17 = vld [vmem:[%s785_s1] sm:$0xff]  ;;  %v28_v20 = vld [vmem:[%s785_s1 + $0x28] sm:$0xff]  ;;  %v29_v22 = vld [vmem:[%s785_s1 + $0x30] sm:$0xff] }
   0x8   :  { %432 = vmatprep.subr.mxu0 %v43_v4  ;;  %473 = vmatprep.subr.mxu1 %v43_v4  ;;  %v27_v18 = vld [vmem:[%s785_s1 + $0x20] sm:$0xff]  ;;  %v49_v23 = vld [vmem:[%s786_s2 + $0x10] sm:$0xff]  ;;  %v26_v25 = vld [vmem:[%s785_s1 + $0x18] sm:$0xff] }
   0x9   :  { %433 = vmatpush3.msra.mxu0 %v43_v4  ;;  %489 = vmatpush3.msra.mxu1 %v43_v4  ;;  %v47_v24 = vld [vmem:[%s786_s2] sm:$0xff]  ;;  %v30_v26 = vld [vmem:[%s785_s1 + $0x38] sm:$0xff]  ;;  %v48_v28 = vld [vmem:[%s786_s2 + $0x8] sm:$0xff] }
   0xa   :  { %434 = vmatprep.subr.mxu0 %v42_v5  ;;  %474 = vmatprep.subr.mxu1 %v42_v5  ;;  %v50_v27 = vld [vmem:[%s786_s2 + $0x18] sm:$0xff]  ;;  %v52_v29 = vld [vmem:[%s786_s2 + $0x28] sm:$0xff]  ;;  %v51_v30 = vld [vmem:[%s786_s2 + $0x20] sm:$0xff] }
   0xb   :  { %435 = vmatpush3.msra.mxu0 %v42_v5  ;;  %490 = vmatpush3.msra.mxu1 %v42_v5  ;;  %v54_v31 = vld [vmem:[%s786_s2 + $0x38] sm:$0xff]  ;;  %v53_v32 = vld [vmem:[%s786_s2 + $0x30] sm:$0xff]  ;;  %v200_v41 = vld [vmem:[%s787_s5] sm:$0xf] }
   0xc   :  { %436 = vmatprep.subr.mxu0 %v41_v6  ;;  %475 = vmatprep.subr.mxu1 %v41_v6  ;;  %v644_v44 = vrot.slane %v200_v41, %v211_v39  ;;  %v646_v45 = vrot.slane %v200_v41, %v203_v40  ;;  %v664_v0 = vrot.slane %v200_v41, %v207_v50 }
   0xd   :  { %437 = vmatpush3.msra.mxu0 %v41_v6  ;;  %491 = vmatpush3.msra.mxu1 %v41_v6  ;;  %v672_v6 = vrot.slane %v200_v41, %v215_v53 }
   0xe   :  { %438 = vmatprep.subr.mxu0 %v40_v7  ;;  %476 = vmatprep.subr.mxu1 %v40_v7 }
   0xf   :  { %439 = vmatpush3.msra.mxu0 %v40_v7  ;;  %492 = vmatpush3.msra.mxu1 %v40_v7 }
  0x10   :  { %440 = vmatprep.subr.mxu0 %v39_v8  ;;  %477 = vmatprep.subr.mxu1 %v39_v8 }
  0x11   :  { %441 = vmatpush3.msra.mxu0 %v39_v8  ;;  %493 = vmatpush3.msra.mxu1 %v39_v8 }
  0x12   :  { %442 = vmatprep.subr.mxu0 %v38_v9  ;;  %478 = vmatprep.subr.mxu1 %v38_v9 }
  0x13   :  { %443 = vmatpush3.msra.mxu0 %v38_v9  ;;  %494 = vmatpush3.msra.mxu1 %v38_v9 }
  0x14   :  { %444 = vmatprep.subr.mxu0 %v37_v10  ;;  %479 = vmatprep.subr.mxu1 %v37_v10 }
  0x15   :  { %445 = vmatpush3.msra.mxu0 %v37_v10  ;;  %495 = vmatpush3.msra.mxu1 %v37_v10 }
  0x16   :  { %446 = vmatprep.subr.mxu0 %v36_v11  ;;  %480 = vmatprep.subr.mxu1 %v36_v11 }
  0x17   :  { %447 = vmatpush3.msra.mxu0 %v36_v11  ;;  %496 = vmatpush3.msra.mxu1 %v36_v11 }
  0x18   :  { %448 = vmatprep.subr.mxu0 %v35_v12  ;;  %481 = vmatprep.subr.mxu1 %v35_v12 }
  0x19   :  { %449 = vmatpush3.msra.mxu0 %v35_v12  ;;  %497 = vmatpush3.msra.mxu1 %v35_v12 }
  0x1a   :  { %450 = vmatprep.subr.mxu0 %v34_v13  ;;  %482 = vmatprep.subr.mxu1 %v34_v13 }
  0x1b   :  { %451 = vmatpush3.msra.mxu0 %v34_v13  ;;  %498 = vmatpush3.msra.mxu1 %v34_v13 }
  0x1c   :  { %452 = vmatprep.subr.mxu0 %v33_v14  ;;  %483 = vmatprep.subr.mxu1 %v33_v14 }
  0x1d   :  { %453 = vmatpush3.msra.mxu0 %v33_v14  ;;  %499 = vmatpush3.msra.mxu1 %v33_v14 }
  0x1e   :  { %454 = vmatprep.subr.mxu0 %v32_v15  ;;  %484 = vmatprep.subr.mxu1 %v32_v15 }
  0x1f   :  { %455 = vmatpush3.msra.mxu0 %v32_v15  ;;  %500 = vmatpush3.msra.mxu1 %v32_v15 }
  0x20   :  { %456 = vmatprep.subr.mxu0 %v31_v16  ;;  %485 = vmatprep.subr.mxu1 %v31_v16 }
  0x21   :  { %457 = vmatpush3.msra.mxu0 %v31_v16  ;;  %501 = vmatpush3.msra.mxu1 %v31_v16 }
  0x22   :  { %458 = vmatprep.mubr.f32.mxu0 %v23_v17  ;;  %464 = vmatprep.mubr.f32.mxu1 %v27_v18 }
  0x23   :  { %459 = vmatmul.mubr.f32.vlgmr.msra.gmra.mxu0 %v24_v19  ;;  %465 = vmatmul.mubr.f32.vlgmr.msra.gmra.mxu1 %v28_v20 }
  0x24   :  { %461 = vmatprep.mubr.f32.mxu0 %v25_v21  ;;  %467 = vmatprep.mubr.f32.mxu1 %v29_v22 }
  0x25   :  { %67 = vperm.xlu1 %504, %v49_v23   ;;  %57 = vperm.xlu0 %503, %v47_v24  }
  0x27   :  { %462 = vmatmul.mubr.f32.gmra.mxu0 %v26_v25  ;;  %468 = vmatmul.mubr.f32.gmra.mxu1 %v30_v26 }
  0x29   :  { %72 = vperm.xlu1 %504, %v50_v27   ;;  %62 = vperm.xlu0 %503, %v48_v28  }
  0x2d   :  { %82 = vperm.xlu1 %504, %v52_v29   ;;  %77 = vperm.xlu0 %503, %v51_v30  }
  0x31   :  { %92 = vperm.xlu1 %504, %v54_v31   ;;  %87 = vperm.xlu0 %503, %v53_v32  }
  0xa0   :  { %v68_v33 = vpop.permute.xlu1 %67  ;;  %v58_v34 = vpop.permute.xlu0 %57 }
  0xa4   :  { %v73_v37 = vpop.permute.xlu1 %72  ;;  %v63_v38 = vpop.permute.xlu0 %62 }
  0xa8   :  { %v83_v42 = vpop.permute.xlu1 %82  ;;  %v78_v43 = vpop.permute.xlu0 %77 }
  0xac   :  { %v88_v60 = vpop.permute.xlu0 %87  ;;  %v93_v12 = vpop.permute.xlu1 %92 }
  0xe3   :  { %v460_v46 = vpop.f32.mrf.mxu0  ;;  %v466_v47 = vpop.f32.mrf.mxu1 }
  0xe4   :  { %v648_v48 = vadd.f32 %v460_v46, %v63_v38  ;;  %v650_v49 = vadd.f32 %v466_v47, %v83_v42 }
  0xe5   :  { %v161_v51 = vpop.f32.mrf.mxu0  ;;  %v181_v52 = vpop.f32.mrf.mxu1 }
  0xe6   :  { %v652_v54 = vadd.f32 %v161_v51, %v58_v34  ;;  %v654_v55 = vadd.f32 %v181_v52, %v78_v43  ;;  %v222_v56 = vmul.f32 %v644_v44, %v650_v49  ;;  %v218_v57 = vmul.f32 %v646_v45, %v648_v48 }
  0xe7   :  { %v463_v58 = vpop.f32.mrf.mxu0  ;;  %v469_v59 = vpop.f32.mrf.mxu1 }
  0xe8   :  { %v660_v61 = vadd.f32 %v463_v58, %v73_v37  ;;  %v241_v62 = vsel %vm225_vm0, %v222_v56, 0.0  ;;  %v229_v63 = vsel %vm225_vm0, %v218_v57, 0.0  ;;  %v221_v3 = vmul.f32 %v644_v44, %v654_v55 }
  0xe9   :  { %242 = vadd.xlane.f32.xlu0 %v241_v62  ;;  %v191_v1 = vpop.f32.mrf.mxu1  ;;  %230 = vadd.xlane.f32.xlu1 %v229_v63  ;;  %v171_v2 = vpop.f32.mrf.mxu0  ;;  %v217_v4 = vmul.f32 %v646_v45, %v652_v54  ;;  %v682_v13 = vadd.f32 %v469_v59, %v93_v12 }
  0xea   :  { %v670_v5 = vadd.f32 %v191_v1, %v88_v60  ;;  %v674_v7 = vadd.f32 %v171_v2, %v68_v33  ;;  %v238_v8 = vsel %vm225_vm0, %v221_v3, 0.0  ;;  %v220_v11 = vmul.f32 %v664_v0, %v660_v61 }
  0xeb   :  { %v226_v9 = vsel %vm225_vm0, %v217_v4, 0.0  ;;  %v224_v18 = vmul.f32 %v672_v6, %v682_v13 }
  0xec   :  { %v223_v10 = vmul.f32 %v672_v6, %v670_v5  ;;  %v235_v15 = vsel %vm225_vm0, %v220_v11, 0.0  ;;  %v219_v16 = vmul.f32 %v664_v0, %v674_v7 }
  0xed   :  { %239 = vadd.xlane.f32.xlu1 %v238_v8  ;;  %227 = vadd.xlane.f32.xlu0 %v226_v9  ;;  %v247_v19 = vsel %vm225_vm0, %v224_v18, 0.0 }
  0xee   :  { %v244_v14 = vsel %vm225_vm0, %v223_v10, 0.0  ;;  %v232_v17 = vsel %vm225_vm0, %v219_v16, 0.0 }
  0xf1   :  { %245 = vadd.xlane.f32.xlu1 %v244_v14  ;;  %236 = vadd.xlane.f32.xlu0 %v235_v15 }
  0xf5   :  { %233 = vadd.xlane.f32.xlu0 %v232_v17 }
  0xf9   :  { %248 = vadd.xlane.f32.xlu0 %v247_v19 }
 0x172   :  { %v243_v20 = vpop.xlane.xlu0 %242  ;;  %v231_v21 = vpop.xlane.xlu1 %230 }
 0x176   :  { %v228_v22 = vpop.xlane.xlu0 %227  ;;  %v240_v24 = vpop.xlane.xlu1 %239 }
 0x17a   :  { %v237_v23 = vpop.xlane.xlu0 %236  ;;  %v246_v30 = vpop.xlane.xlu1 %245 }
 0x17b   :  { %v251_v25 = vadd.f32 %v237_v23, %v231_v21 }
 0x17d   :  { %v253_v29 = vadd.f32 %v251_v25, %v243_v20 }
 0x17e   :  { %v234_v26 = vpop.xlane.xlu0 %233 }
 0x17f   :  { %v250_v27 = vadd.f32 %v234_v26, %v228_v22 }
 0x181   :  { %v252_v28 = vadd.f32 %v250_v27, %v240_v24 }
 0x182   :  { %v249_v31 = vpop.xlane.xlu0 %248 }
 0x183   :  { %v255_v32 = vadd.f32 %v253_v29, %v249_v31  ;;  %v254_v33 = vadd.f32 %v252_v28, %v246_v30 }
 0x185   :  { %v692_v34 = vmul.f32 0.0078125, %v255_v32  ;;  %v694_v35 = vmul.f32 0.0078125, %v254_v33 }
 0x187   :  { %260 = vperm.xlu1 %504, %v694_v35   ;;  %265 = vperm.xlu0 %503, %v692_v34  }
 0x202   :  { %v261_v36 = vpop.permute.xlu1 %260  ;;  %v266_v37 = vpop.permute.xlu0 %265 }
 0x203   :  { %v268_v38 = vsub.f32 %v652_v54, %v261_v36  ;;  %v269_v39 = vsub.f32 %v648_v48, %v266_v37  ;;  %v270_v40 = vsub.f32 %v674_v7, %v261_v36  ;;  %v271_v41 = vsub.f32 %v660_v61, %v266_v37 }
 0x204   :  { %v272_v42 = vsub.f32 %v654_v55, %v261_v36  ;;  %v273_v43 = vsub.f32 %v650_v49, %v266_v37  ;;  %v274_v58 = vsub.f32 %v670_v5, %v261_v36  ;;  %v275_v59 = vsub.f32 %v682_v13, %v266_v37 }
 0x205   :  { %v276_v46 = vmul.f32 %v268_v38, %v646_v45  ;;  %v277_v47 = vmul.f32 %v269_v39, %v646_v45  ;;  %v278_v50 = vmul.f32 %v270_v40, %v664_v0  ;;  %v279_v51 = vmul.f32 %v271_v41, %v664_v0  ;;  %v324_v38 = vld [vmem:[%s788_s3] sm:$0xff]  ;;  %v325_v39 = vld [vmem:[%s788_s3 + $0x8] sm:$0xff] }
 0x206   :  { %v280_v56 = vmul.f32 %v272_v42, %v644_v44  ;;  %v281_v57 = vmul.f32 %v273_v43, %v644_v44  ;;  %v282_v2 = vmul.f32 %v274_v58, %v672_v6  ;;  %v283_v3 = vmul.f32 %v275_v59, %v672_v6 }
 0x207   :  { %v284_v52 = vmul.f32 %v276_v46, %v276_v46  ;;  %v285_v53 = vmul.f32 %v277_v47, %v277_v47  ;;  %v286_v63 = vmul.f32 %v278_v50, %v278_v50  ;;  %v287_v1 = vmul.f32 %v279_v51, %v279_v51  ;;  %v332_v46 = vld [vmem:[%s789_s4] sm:$0xff] }
 0x208   :  { %v288_v9 = vmul.f32 %v280_v56, %v280_v56  ;;  %v289_v10 = vmul.f32 %v281_v57, %v281_v57  ;;  %v290_v14 = vmul.f32 %v282_v2, %v282_v2  ;;  %v291_v15 = vmul.f32 %v283_v3, %v283_v3 }
 0x209   :  { %v292_v60 = vsel %vm225_vm0, %v284_v52, 0.0  ;;  %v295_v62 = vsel %vm225_vm0, %v285_v53, 0.0  ;;  %v298_v4 = vsel %vm225_vm0, %v286_v63, 0.0  ;;  %v301_v8 = vsel %vm225_vm0, %v287_v1, 0.0  ;;  %v333_v52 = vld [vmem:[%s789_s4 + $0x8] sm:$0xff] }
 0x20a   :  { %293 = vadd.xlane.f32.xlu1 %v292_v60  ;;  %296 = vadd.xlane.f32.xlu0 %v295_v62  ;;  %v304_v11 = vsel %vm225_vm0, %v288_v9, 0.0  ;;  %v307_v12 = vsel %vm225_vm0, %v289_v10, 0.0  ;;  %v310_v16 = vsel %vm225_vm0, %v290_v14, 0.0  ;;  %v313_v17 = vsel %vm225_vm0, %v291_v15, 0.0 }
 0x20e   :  { %299 = vadd.xlane.f32.xlu1 %v298_v4  ;;  %302 = vadd.xlane.f32.xlu0 %v301_v8 }
 0x212   :  { %305 = vadd.xlane.f32.xlu1 %v304_v11  ;;  %308 = vadd.xlane.f32.xlu0 %v307_v12 }
 0x216   :  { %311 = vadd.xlane.f32.xlu1 %v310_v16  ;;  %314 = vadd.xlane.f32.xlu0 %v313_v17 }
 0x293   :  { %v294_v18 = vpop.xlane.xlu1 %293  ;;  %v297_v19 = vpop.xlane.xlu0 %296 }
 0x297   :  { %v300_v20 = vpop.xlane.xlu1 %299  ;;  %v303_v21 = vpop.xlane.xlu0 %302 }
 0x298   :  { %v316_v24 = vadd.f32 %v300_v20, %v294_v18  ;;  %v317_v25 = vadd.f32 %v303_v21, %v297_v19 }
 0x29b   :  { %v306_v22 = vpop.xlane.xlu1 %305  ;;  %v309_v23 = vpop.xlane.xlu0 %308 }
 0x29c   :  { %v318_v26 = vadd.f32 %v316_v24, %v306_v22  ;;  %v319_v27 = vadd.f32 %v317_v25, %v309_v23 }
 0x29f   :  { %v312_v28 = vpop.xlane.xlu1 %311  ;;  %v315_v29 = vpop.xlane.xlu0 %314 }
 0x2a0   :  { %v320_v30 = vadd.f32 %v318_v26, %v312_v28  ;;  %v321_v31 = vadd.f32 %v319_v27, %v315_v29 }
 0x2a2   :  { %v322_v32 = vmul.f32 0.0078125, %v320_v30  ;;  %v323_v33 = vmul.f32 0.0078125, %v321_v31 }
 0x2a4   :  { %v326_v36 = vadd.f32 1e-05, %v322_v32  ;;  %v327_v37 = vadd.f32 1e-05, %v323_v33 }
 0x2a6   :  { %505 = vrsqrt.f32 %v326_v36 }
 0x2a7   :  { %507 = vrsqrt.f32 %v327_v37 }
 0x2b3   :  { %v506_v40 = vpop.eup %505 }
 0x2b4   :  { %v508_v41 = vpop.eup %507  ;;  %v330_v42 = vmul.f32 %v506_v40, %v324_v38 }
 0x2b5   :  { %v331_v43 = vmul.f32 %v508_v41, %v325_v39 }
 0x2b6   :  { %340 = vperm.xlu1 %504, %v330_v42   ;;  %v334_v47 = vmul.f32 %v330_v42, %v694_v35 }
 0x2b7   :  { %345 = vperm.xlu0 %503, %v331_v43   ;;  %v335_v51 = vmul.f32 %v331_v43, %v692_v34 }
 0x2b8   :  { %v336_v50 = vsub.f32 %v332_v46, %v334_v47 }
 0x2b9   :  { %v337_v53 = vsub.f32 %v333_v52, %v335_v51 }
 0x2ba   :  { %358 = vperm.xlu1 %504, %v336_v50  }
 0x2be   :  { %363 = vperm.xlu1 %504, %v337_v53  }
 0x331   :  { %v341_v56 = vpop.permute.xlu1 %340 }
 0x332   :  { %v348_v57 = vmul.f32 %v341_v56, %v652_v54  ;;  %v350_v58 = vmul.f32 %v341_v56, %v674_v7  ;;  %v352_v59 = vmul.f32 %v341_v56, %v654_v55  ;;  %v354_v35 = vmul.f32 %v341_v56, %v670_v5  ;;  %v346_v62 = vpop.permute.xlu0 %345 }
 0x333   :  { %v349_v10 = vmul.f32 %v346_v62, %v648_v48  ;;  %v351_v54 = vmul.f32 %v346_v62, %v660_v61  ;;  %v353_v7 = vmul.f32 %v346_v62, %v650_v49  ;;  %v355_v55 = vmul.f32 %v346_v62, %v682_v13 }
 0x335   :  { %v359_v60 = vpop.permute.xlu1 %358 }
 0x336   :  { %v366_v63 = vadd.f32 %v359_v60, %v348_v57  ;;  %v368_v34 = vadd.f32 %v359_v60, %v350_v58  ;;  %v370_v1 = vadd.f32 %v359_v60, %v352_v59  ;;  %v372_v2 = vadd.f32 %v359_v60, %v354_v35 }
 0x338   :  { %v374_v3 = vmax.f32 %v366_v63, 0.0  ;;  %v376_v4 = vmax.f32 %v368_v34, 0.0  ;;  %v378_v8 = vmax.f32 %v370_v1, 0.0  ;;  %v380_v9 = vmax.f32 %v372_v2, 0.0 }
 0x339   :  { %v364_v11 = vpop.permute.xlu1 %363 }
 0x33a   :  { %v382_v5 = vmul.f32 %v374_v3, %v646_v45  ;;  %v384_v12 = vmul.f32 %v376_v4, %v664_v0  ;;  %v386_v14 = vmul.f32 %v378_v8, %v644_v44  ;;  %v388_v15 = vmul.f32 %v380_v9, %v672_v6 }
 0x33b   :  { %v367_v16 = vadd.f32 %v364_v11, %v349_v10  ;;  %v369_v17 = vadd.f32 %v364_v11, %v351_v54  ;;  %v371_v18 = vadd.f32 %v364_v11, %v353_v7  ;;  %v373_v19 = vadd.f32 %v364_v11, %v355_v55 }
 0x33c   :  { %390 = vst.msk [vmem:[%s790_s6] sm:$0xff] %vm225_vm0, %v382_v5  ;;  %392 = vst.msk [vmem:[%s790_s6 + $0x10] sm:$0xff] %vm225_vm0, %v384_v12 }
 0x33d   :  { %394 = vst.msk [vmem:[%s790_s6 + $0x20] sm:$0xff] %vm225_vm0, %v386_v14  ;;  %396 = vst.msk [vmem:[%s790_s6 + $0x30] sm:$0xff] %vm225_vm0, %v388_v15  ;;  %v375_v48 = vmax.f32 %v367_v16, 0.0  ;;  %v377_v49 = vmax.f32 %v369_v17, 0.0  ;;  %v379_v61 = vmax.f32 %v371_v18, 0.0  ;;  %v381_v13 = vmax.f32 %v373_v19, 0.0 }
 0x33f   :  { %v383_v20 = vmul.f32 %v375_v48, %v646_v45  ;;  %v385_v21 = vmul.f32 %v377_v49, %v664_v0  ;;  %v387_v22 = vmul.f32 %v379_v61, %v644_v44  ;;  %v389_v23 = vmul.f32 %v381_v13, %v672_v6 }
 0x341   :  { %391 = vst.msk [vmem:[%s790_s6 + $0x8] sm:$0xff] %vm225_vm0, %v383_v20  ;;  %393 = vst.msk [vmem:[%s790_s6 + $0x18] sm:$0xff] %vm225_vm0, %v385_v21 }
 0x342   :  { %395 = vst.msk [vmem:[%s790_s6 + $0x28] sm:$0xff] %vm225_vm0, %v387_v22  ;;  %397 = vst.msk [vmem:[%s790_s6 + $0x38] sm:$0xff] %vm225_vm0, %v389_v23 }

// kernel: decoder_forward.7
= control target key start
LH: loop header
LB: loop body
LE: loop exit
PB: predicated region body
PF: predicated region fallthrough
CT: control target
= control target key end

     0   :  { %v408_v3 = vmov 0.0   ;;  %vm67_vm0 = vcmask 523264   ;;  %v409_v23 = vmov 0   ;;  %v171_v26 = vlaneseq  ;;  %s646_s0 = inlined_call_operand.vmem [shape: f32[64,162], index: 0, kind: input, shape index: {}]   ;;  %s647_s1 = inlined_call_operand.vmem [shape: f32[32,64], index: 1, kind: input, shape index: {}]   ;;  %s648_s2 = inlined_call_operand.vmem [shape: f32[32,1], index: 2, kind: input, shape index: {}]   ;;  %s649_s5 = inlined_call_operand.vmem [shape: f32[4,162], index: 5, kind: input, shape index: {}]   ;;  %s650_s3 = inlined_call_operand.vmem [shape: f32[8,1], index: 3, kind: input, shape index: {}]   ;;  %s651_s4 = inlined_call_operand.vmem [shape: f32[8,1], index: 4, kind: input, shape index: {}]   ;;  %s652_s6 = inlined_call_operand.vmem [shape: f32[32,162], index: 6, kind: output, shape index: {}]  }
   0x1   :  { %v42_v0 = vld [vmem:[%s646_s0 + $0x78] sm:$0xff]  ;;  %v41_v1 = vld [vmem:[%s646_s0 + $0x70] sm:$0xff]  ;;  %v40_v2 = vld [vmem:[%s646_s0 + $0x68] sm:$0xff]  ;;  %144 = vmatprep.mubr.f32.mxu0 %v408_v3  ;;  %156 = vmatprep.mubr.f32.mxu1 %v408_v3  ;;  %vm251_vm1 = vcmask 277504  }
   0x2   :  { %96 = vmatprep.subr.mxu0 %v42_v0  ;;  %386 = vmatprep.subr.mxu1 %v42_v0  ;;  %v39_v4 = vld [vmem:[%s646_s0 + $0x60] sm:$0xff]  ;;  %v38_v5 = vld [vmem:[%s646_s0 + $0x58] sm:$0xff]  ;;  %v37_v6 = vld [vmem:[%s646_s0 + $0x50] sm:$0xff]  ;;  %v172_v27 = vshrl.u32 %v171_v26, 7 }
   0x3   :  { %97 = vmatpush1.msra.mxu0 %v41_v1  ;;  %394 = vmatpush1.msra.mxu1 %v41_v1  ;;  %v36_v7 = vld [vmem:[%s646_s0 + $0x48] sm:$0xff]  ;;  %v35_v8 = vld [vmem:[%s646_s0 + $0x40] sm:$0xff]  ;;  %v34_v9 = vld [vmem:[%s646_s0 + $0x38] sm:$0xff] }
   0x4   :  { %98 = vmatprep.subr.mxu0 %v40_v2  ;;  %387 = vmatprep.subr.mxu1 %v40_v2  ;;  %v33_v10 = vld [vmem:[%s646_s0 + $0x30] sm:$0xff]  ;;  %v32_v11 = vld [vmem:[%s646_s0 + $0x28] sm:$0xff]  ;;  %v31_v12 = vld [vmem:[%s646_s0 + $0x20] sm:$0xff]  ;;  %v177_v28 = vsub.s32 4, %v172_v27  ;;  %v213_v29 = vsub.s32 6, %v172_v27  ;;  %v173_v30 = vsub.s32 0, %v172_v27 }
   0x5   :  { %99 = vmatpush1.msra.mxu0 %v39_v4  ;;  %395 = vmatpush1.msra.mxu1 %v39_v4  ;;  %v30_v13 = vld [vmem:[%s646_s0 + $0x18] sm:$0xff]  ;;  %v29_v14 = vld [vmem:[%s646_s0 + $0x10] sm:$0xff]  ;;  %v28_v15 = vld [vmem:[%s646_s0 + $0x8] sm:$0xff]  ;;  %v209_v32 = vsub.s32 2, %v172_v27  ;;  %v195_v35 = vsub.s32 5, %v172_v27  ;;  %v231_v37 = vsub.s32 7, %v172_v27 }
   0x6   :  { %100 = vmatprep.subr.mxu0 %v38_v5  ;;  %388 = vmatprep.subr.mxu1 %v38_v5  ;;  %v27_v16 = vld [vmem:[%s646_s0] sm:$0xff]  ;;  %v25_v18 = vld [vmem:[%s647_s1 + $0x10] sm:$0xff]  ;;  %v24_v21 = vld [vmem:[%s647_s1 + $0x8] sm:$0xff]  ;;  %v191_v39 = vsub.s32 1, %v172_v27  ;;  %v227_v44 = vsub.s32 3, %v172_v27 }
   0x7   :  { %101 = vmatpush1.msra.mxu0 %v37_v6  ;;  %396 = vmatpush1.msra.mxu1 %v37_v6  ;;  %v23_v17 = vld [vmem:[%s647_s1] sm:$0xff]  ;;  %v45_v20 = vld [vmem:[%s648_s2 + $0x10] sm:$0xff]  ;;  %v26_v22 = vld [vmem:[%s647_s1 + $0x18] sm:$0xff] }
   0x8   :  { %102 = vmatprep.subr.mxu0 %v36_v7  ;;  %389 = vmatprep.subr.mxu1 %v36_v7  ;;  %v43_v19 = vld [vmem:[%s648_s2] sm:$0xff]  ;;  %v44_v24 = vld [vmem:[%s648_s2 + $0x8] sm:$0xff]  ;;  %v46_v25 = vld [vmem:[%s648_s2 + $0x18] sm:$0xff] }
   0x9   :  { %103 = vmatpush1.msra.mxu0 %v35_v8  ;;  %397 = vmatpush1.msra.mxu1 %v35_v8  ;;  %v169_v31 = vld [vmem:[%s649_s5] sm:$0xff] }
   0xa   :  { %104 = vmatprep.subr.mxu0 %v34_v9  ;;  %390 = vmatprep.subr.mxu1 %v34_v9  ;;  %v178_v34 = vrot.slane %v169_v31, %v177_v28  ;;  %v214_v36 = vrot.slane %v169_v31, %v213_v29  ;;  %v174_v38 = vrot.slane %v169_v31, %v173_v30 }
   0xb   :  { %105 = vmatpush1.msra.mxu0 %v33_v10  ;;  %398 = vmatpush1.msra.mxu1 %v33_v10  ;;  %v210_v43 = vrot.slane %v169_v31, %v209_v32  ;;  %v196_v46 = vrot.slane %v169_v31, %v195_v35  ;;  %v232_v48 = vrot.slane %v169_v31, %v231_v37 }
   0xc   :  { %106 = vmatprep.subr.mxu0 %v32_v11  ;;  %391 = vmatprep.subr.mxu1 %v32_v11  ;;  %v524_v45 = vrot.slane %v178_v34, %v173_v30  ;;  %v526_v47 = vrot.slane %v214_v36, %v209_v32  ;;  %v530_v52 = vrot.slane %v174_v38, %v173_v30 }
   0xd   :  { %107 = vmatpush1.msra.mxu0 %v31_v12  ;;  %399 = vmatpush1.msra.mxu1 %v31_v12  ;;  %v192_v53 = vrot.slane %v169_v31, %v191_v39  ;;  %v538_v60 = vrot.slane %v210_v43, %v209_v32  ;;  %v228_v61 = vrot.slane %v169_v31, %v227_v44 }
   0xe   :  { %108 = vmatprep.subr.mxu0 %v30_v13  ;;  %392 = vmatprep.subr.mxu1 %v30_v13  ;;  %v542_v0 = vrot.slane %v196_v46, %v191_v39  ;;  %v546_v2 = vrot.slane %v232_v48, %v227_v44 }
   0xf   :  { %109 = vmatpush1.msra.mxu0 %v29_v14  ;;  %400 = vmatpush1.msra.mxu1 %v29_v14  ;;  %v552_v7 = vrot.slane %v192_v53, %v191_v39  ;;  %v563_v14 = vrot.slane %v228_v61, %v227_v44 }
  0x10   :  { %110 = vmatprep.subr.mxu0 %v28_v15  ;;  %393 = vmatprep.subr.mxu1 %v28_v15 }
  0x11   :  { %111 = vmatpush1.msra.mxu0 %v27_v16  ;;  %401 = vmatpush1.msra.mxu1 %v27_v16 }
  0x12   :  { %382 = vmatmul.mubr.msk.f32.vlgmr.msra.gmra.mxu0 %vm67_vm0, %v23_v17  ;;  %384 = vmatmul.mubr.msk.f32.vlgmr.msra.gmra.mxu1 %vm67_vm0, %v25_v18 }
  0x13   :  { %150 = vmatprep.mubr.f32.mxu0 %v408_v3  ;;  %162 = vmatprep.mubr.f32.mxu1 %v408_v3 }
  0x14   :  { %404 = vset.pattern.permute.xlu0 %v409_v23  ;;  %405 = vset.pattern.permute.xlu1 %v409_v23 }
  0x15   :  { %49 = vperm.xlu0 %404, %v43_v19   ;;  %59 = vperm.xlu1 %405, %v45_v20  }
  0x16   :  { %383 = vmatmul.mubr.msk.f32.gmra.mxu0 %vm67_vm0, %v24_v21  ;;  %385 = vmatmul.mubr.msk.f32.gmra.mxu1 %vm67_vm0, %v26_v22 }
  0x19   :  { %54 = vperm.xlu0 %404, %v44_v24   ;;  %64 = vperm.xlu1 %405, %v46_v25  }
  0x90   :  { %v60_v33 = vpop.permute.xlu1 %59  ;;  %v50_v40 = vpop.permute.xlu0 %49 }
  0x94   :  { %v65_v56 = vpop.permute.xlu1 %64  ;;  %v55_v62 = vpop.permute.xlu0 %54 }
  0xd2   :  { %v146_v41 = vpop.f32.mrf.mxu0  ;;  %v158_v42 = vpop.f32.mrf.mxu1 }
  0xd3   :  { %v528_v49 = vadd.f32 %v146_v41, %v50_v40  ;;  %v536_v57 = vadd.f32 %v158_v42, %v60_v33 }
  0xd4   :  { %v148_v50 = vpop.f32.mrf.mxu0  ;;  %v160_v51 = vpop.f32.mrf.mxu1 }
  0xd5   :  { %v532_v54 = vadd.f32 %v148_v50, %v50_v40  ;;  %v534_v55 = vadd.f32 %v160_v51, %v60_v33  ;;  %v243_v6 = vmul.f32 %v530_v52, %v528_v49  ;;  %v247_v13 = vmul.f32 %v538_v60, %v536_v57 }
  0xd6   :  { %v152_v58 = vpop.f32.mrf.mxu0  ;;  %v164_v59 = vpop.f32.mrf.mxu1 }
  0xd7   :  { %v244_v63 = vmul.f32 %v524_v45, %v532_v54  ;;  %v248_v1 = vmul.f32 %v526_v47, %v534_v55  ;;  %v548_v3 = vadd.f32 %v152_v58, %v55_v62  ;;  %v559_v11 = vadd.f32 %v164_v59, %v65_v56 }
  0xd8   :  { %v154_v4 = vpop.f32.mrf.mxu0  ;;  %v166_v5 = vpop.f32.mrf.mxu1 }
  0xd9   :  { %v554_v8 = vadd.f32 %v154_v4, %v55_v62  ;;  %v556_v9 = vadd.f32 %v166_v5, %v65_v56  ;;  %v252_v10 = vsel %vm251_vm1, %v244_v63, 0.0  ;;  %v260_v16 = vsel %vm251_vm1, %v248_v1, 0.0 }
  0xda   :  { %v253_v12 = vadd.f32 %v252_v10, %v243_v6  ;;  %v245_v18 = vmul.f32 %v552_v7, %v548_v3  ;;  %v261_v21 = vadd.f32 %v260_v16, %v247_v13  ;;  %v249_v22 = vmul.f32 %v563_v14, %v559_v11 }
  0xdb   :  { %v246_v15 = vmul.f32 %v542_v0, %v554_v8  ;;  %v250_v17 = vmul.f32 %v546_v2, %v556_v9 }
  0xdc   :  { %254 = vadd.xlane.f32.xlu0 %v253_v12 }
  0xdd   :  { %v256_v19 = vsel %vm251_vm1, %v246_v15, 0.0  ;;  %v264_v23 = vsel %vm251_vm1, %v250_v17, 0.0 }
  0xde   :  { %v257_v20 = vadd.f32 %v256_v19, %v245_v18  ;;  %v265_v24 = vadd.f32 %v264_v23, %v249_v22 }
  0xe0   :  { %258 = vadd.xlane.f32.xlu1 %v257_v20  ;;  %262 = vadd.xlane.f32.xlu0 %v261_v21 }
  0xe4   :  { %266 = vadd.xlane.f32.xlu0 %v265_v24 }
 0x165   :  { %v255_v25 = vpop.xlane.xlu0 %254 }
 0x169   :  { %v259_v26 = vpop.xlane.xlu1 %258  ;;  %v263_v27 = vpop.xlane.xlu0 %262 }
 0x16a   :  { %v268_v28 = vadd.f32 %v259_v26, %v255_v25 }
 0x16c   :  { %v269_v29 = vadd.f32 %v268_v28, %v263_v27  ;;  %v321_v27 = vld [vmem:[%s650_s3] sm:$0xff] }
 0x16d   :  { %v267_v30 = vpop.xlane.xlu0 %266 }
 0x16e   :  { %v270_v31 = vadd.f32 %v269_v29, %v267_v30  ;;  %v325_v30 = vld [vmem:[%s651_s4] sm:$0xff] }
 0x170   :  { %v271_v32 = vmul.f32 0.001953125, %v270_v31 }
 0x172   :  { %274 = vperm.xlu1 %405, %v271_v32  }
 0x1ed   :  { %v275_v33 = vpop.permute.xlu1 %274 }
 0x1ee   :  { %v277_v34 = vsub.f32 %v528_v49, %v275_v33  ;;  %v278_v35 = vsub.f32 %v532_v54, %v275_v33  ;;  %v279_v36 = vsub.f32 %v548_v3, %v275_v33  ;;  %v280_v37 = vsub.f32 %v554_v8, %v275_v33 }
 0x1ef   :  { %v282_v38 = vsub.f32 %v534_v55, %v275_v33  ;;  %v281_v43 = vsub.f32 %v536_v57, %v275_v33  ;;  %v284_v44 = vsub.f32 %v556_v9, %v275_v33  ;;  %v283_v61 = vsub.f32 %v559_v11, %v275_v33 }
 0x1f0   :  { %v285_v39 = vmul.f32 %v277_v34, %v530_v52  ;;  %v286_v40 = vmul.f32 %v278_v35, %v524_v45  ;;  %v288_v41 = vmul.f32 %v280_v37, %v542_v0  ;;  %v287_v42 = vmul.f32 %v279_v36, %v552_v7 }
 0x1f1   :  { %v290_v51 = vmul.f32 %v282_v38, %v526_v47  ;;  %v289_v59 = vmul.f32 %v281_v43, %v538_v60  ;;  %v292_v1 = vmul.f32 %v284_v44, %v546_v2  ;;  %v291_v6 = vmul.f32 %v283_v61, %v563_v14 }
 0x1f2   :  { %v293_v46 = vmul.f32 %v285_v39, %v285_v39  ;;  %v294_v48 = vmul.f32 %v286_v40, %v286_v40  ;;  %v296_v50 = vmul.f32 %v288_v41, %v288_v41  ;;  %v295_v58 = vmul.f32 %v287_v42, %v287_v42 }
 0x1f3   :  { %v298_v63 = vmul.f32 %v290_v51, %v290_v51  ;;  %v297_v5 = vmul.f32 %v289_v59, %v289_v59  ;;  %v300_v12 = vmul.f32 %v292_v1, %v292_v1  ;;  %v299_v15 = vmul.f32 %v291_v6, %v291_v6 }
 0x1f4   :  { %v301_v53 = vsel %vm251_vm1, %v294_v48, 0.0  ;;  %v305_v62 = vsel %vm251_vm1, %v296_v50, 0.0 }
 0x1f5   :  { %v302_v56 = vadd.f32 %v301_v53, %v293_v46  ;;  %v306_v4 = vadd.f32 %v305_v62, %v295_v58  ;;  %v309_v10 = vsel %vm251_vm1, %v298_v63, 0.0  ;;  %v313_v16 = vsel %vm251_vm1, %v300_v12, 0.0 }
 0x1f6   :  { %v310_v13 = vadd.f32 %v309_v10, %v297_v5  ;;  %v314_v17 = vadd.f32 %v313_v16, %v299_v15 }
 0x1f7   :  { %303 = vadd.xlane.f32.xlu0 %v302_v56 }
 0x1fb   :  { %307 = vadd.xlane.f32.xlu0 %v306_v4 }
 0x1ff   :  { %311 = vadd.xlane.f32.xlu0 %v310_v13 }
 0x203   :  { %315 = vadd.xlane.f32.xlu0 %v314_v17 }
 0x280   :  { %v304_v18 = vpop.xlane.xlu0 %303 }
 0x284   :  { %v308_v19 = vpop.xlane.xlu0 %307 }
 0x285   :  { %v317_v21 = vadd.f32 %v308_v19, %v304_v18 }
 0x288   :  { %v312_v20 = vpop.xlane.xlu0 %311 }
 0x289   :  { %v318_v22 = vadd.f32 %v317_v21, %v312_v20 }
 0x28c   :  { %v316_v23 = vpop.xlane.xlu0 %315 }
 0x28d   :  { %v319_v24 = vadd.f32 %v318_v22, %v316_v23 }
 0x28f   :  { %v320_v25 = vmul.f32 0.001953125, %v319_v24 }
 0x291   :  { %v322_v26 = vadd.f32 1e-05, %v320_v25 }
 0x293   :  { %406 = vrsqrt.f32 %v322_v26 }
 0x2a0   :  { %v407_v28 = vpop.eup %406 }
 0x2a1   :  { %v324_v29 = vmul.f32 %v407_v28, %v321_v27 }
 0x2a3   :  { %330 = vperm.xlu1 %405, %v324_v29   ;;  %v326_v31 = vmul.f32 %v324_v29, %v271_v32 }
 0x2a5   :  { %v327_v33 = vsub.f32 %v325_v30, %v326_v31 }
 0x2a7   :  { %343 = vperm.xlu0 %404, %v327_v33  }
 0x31e   :  { %v331_v34 = vpop.permute.xlu1 %330 }
 0x31f   :  { %v333_v35 = vmul.f32 %v331_v34, %v528_v49  ;;  %v334_v36 = vmul.f32 %v331_v34, %v532_v54  ;;  %v335_v37 = vmul.f32 %v331_v34, %v548_v3  ;;  %v336_v38 = vmul.f32 %v331_v34, %v554_v8 }
 0x320   :  { %v337_v39 = vmul.f32 %v331_v34, %v536_v57  ;;  %v338_v40 = vmul.f32 %v331_v34, %v534_v55  ;;  %v339_v41 = vmul.f32 %v331_v34, %v559_v11  ;;  %v340_v42 = vmul.f32 %v331_v34, %v556_v9 }
 0x322   :  { %v344_v32 = vpop.permute.xlu0 %343 }
 0x323   :  { %v346_v43 = vadd.f32 %v344_v32, %v333_v35  ;;  %v347_v44 = vadd.f32 %v344_v32, %v334_v36  ;;  %v348_v46 = vadd.f32 %v344_v32, %v335_v37  ;;  %v349_v48 = vadd.f32 %v344_v32, %v336_v38 }
 0x324   :  { %v350_v49 = vadd.f32 %v344_v32, %v337_v39  ;;  %v351_v50 = vadd.f32 %v344_v32, %v338_v40  ;;  %v352_v54 = vadd.f32 %v344_v32, %v339_v41  ;;  %v353_v51 = vadd.f32 %v344_v32, %v340_v42 }
 0x325   :  { %v354_v3 = vmax.f32 %v346_v43, 0.0  ;;  %v355_v53 = vmax.f32 %v347_v44, 0.0  ;;  %v356_v8 = vmax.f32 %v348_v46, 0.0  ;;  %v357_v56 = vmax.f32 %v349_v48, 0.0 }
 0x326   :  { %v358_v57 = vmax.f32 %v350_v49, 0.0  ;;  %v359_v58 = vmax.f32 %v351_v50, 0.0  ;;  %v360_v55 = vmax.f32 %v352_v54, 0.0  ;;  %v361_v59 = vmax.f32 %v353_v51, 0.0 }
 0x327   :  { %v362_v11 = vmul.f32 %v354_v3, %v530_v52  ;;  %v363_v9 = vmul.f32 %v355_v53, %v524_v45  ;;  %v364_v61 = vmul.f32 %v356_v8, %v552_v7  ;;  %v365_v62 = vmul.f32 %v357_v56, %v542_v0 }
 0x328   :  { %v366_v63 = vmul.f32 %v358_v57, %v538_v60  ;;  %v367_v1 = vmul.f32 %v359_v58, %v526_v47  ;;  %v368_v4 = vmul.f32 %v360_v55, %v563_v14  ;;  %v369_v5 = vmul.f32 %v361_v59, %v546_v2 }
 0x329   :  { %370 = vst [vmem:[%s652_s6] sm:$0xff] %v362_v11  ;;  %371 = vst.msk [vmem:[%s652_s6 + $0x8] sm:$0xff] %vm251_vm1, %v363_v9 }
 0x32a   :  { %372 = vst [vmem:[%s652_s6 + $0x10] sm:$0xff] %v364_v61  ;;  %373 = vst.msk [vmem:[%s652_s6 + $0x18] sm:$0xff] %vm251_vm1, %v365_v62 }
 0x32b   :  { %374 = vst [vmem:[%s652_s6 + $0x20] sm:$0xff] %v366_v63  ;;  %375 = vst.msk [vmem:[%s652_s6 + $0x28] sm:$0xff] %vm251_vm1, %v367_v1 }
 0x32c   :  { %376 = vst [vmem:[%s652_s6 + $0x30] sm:$0xff] %v368_v4  ;;  %377 = vst.msk [vmem:[%s652_s6 + $0x38] sm:$0xff] %vm251_vm1, %v369_v5 }

// kernel: decoder_forward.8
= control target key start
LH: loop header
LB: loop body
LE: loop exit
PB: predicated region body
PF: predicated region fallthrough
CT: control target
= control target key end

     0   :  { %v696_v3 = vmov 0.0   ;;  %vm57_vm0 = vcmask 261120   ;;  %v697_v22 = vmov 0   ;;  %v299_v26 = vlaneseq  ;;  %s1027_s0 = inlined_call_operand.vmem [shape: f32[32,578], index: 0, kind: input, shape index: {}]   ;;  %s1028_s1 = inlined_call_operand.vmem [shape: f32[16,32], index: 1, kind: input, shape index: {}]   ;;  %s1029_s2 = inlined_call_operand.vmem [shape: f32[16,1], index: 2, kind: input, shape index: {}]   ;;  %s1030_s5 = inlined_call_operand.vmem [shape: f32[4,578], index: 5, kind: input, shape index: {}]   ;;  %s1031_s3 = inlined_call_operand.vmem [shape: f32[4,1], index: 3, kind: input, shape index: {}]   ;;  %s1032_s4 = inlined_call_operand.vmem [shape: f32[4,1], index: 4, kind: input, shape index: {}]   ;;  %s1033_s6 = inlined_call_operand.vmem [shape: f32[16,578], index: 6, kind: output, shape index: {}]  }
   0x1   :  { %v41_v0 = vld [vmem:[%s1027_s0 + $0x80] sm:$0xff]  ;;  %v43_v1 = vld [vmem:[%s1027_s0 + $0x90] sm:$0xff]  ;;  %v40_v2 = vld [vmem:[%s1027_s0 + $0x78] sm:$0xff]  ;;  %128 = vmatprep.mubr.f32.mxu0 %v696_v3  ;;  %205 = vmatprep.mubr.f32.mxu1 %v696_v3  ;;  %vm479_vm1 = vcmask 1043456   ;;  %vm503_vm2 = vcmask 539648  }
   0x2   :  { %88 = vmatprep.subr.mxu0 %v41_v0  ;;  %165 = vmatprep.subr.mxu1 %v43_v1  ;;  %v42_v4 = vld [vmem:[%s1027_s0 + $0x88] sm:$0xff]  ;;  %v36_v5 = vld [vmem:[%s1027_s0 + $0x58] sm:$0xff]  ;;  %v35_v7 = vld [vmem:[%s1027_s0 + $0x50] sm:$0xff]  ;;  %v300_v27 = vshrl.u32 %v299_v26, 7 }
   0x3   :  { %v38_v6 = vld [vmem:[%s1027_s0 + $0x68] sm:$0xff]  ;;  %89 = vmatpush1.msra.mxu0 %v40_v2  ;;  %166 = vmatpush1.msra.mxu1 %v42_v4  ;;  %v37_v8 = vld [vmem:[%s1027_s0 + $0x60] sm:$0xff]  ;;  %v31_v9 = vld [vmem:[%s1027_s0 + $0x30] sm:$0xff] }
   0x4   :  { %90 = vmatprep.subr.mxu0 %v36_v5  ;;  %167 = vmatprep.subr.mxu1 %v38_v6  ;;  %v33_v10 = vld [vmem:[%s1027_s0 + $0x40] sm:$0xff]  ;;  %v30_v11 = vld [vmem:[%s1027_s0 + $0x28] sm:$0xff]  ;;  %v32_v12 = vld [vmem:[%s1027_s0 + $0x38] sm:$0xff]  ;;  %v305_v28 = vsub.s32 4, %v300_v27  ;;  %v350_v29 = vsub.s32 5, %v300_v27  ;;  %v814_v31 = vsub.s32 0, %v300_v27 }
   0x5   :  { %91 = vmatpush1.msra.mxu0 %v35_v7  ;;  %168 = vmatpush1.msra.mxu1 %v37_v8  ;;  %v26_v13 = vld [vmem:[%s1027_s0 + $0x8] sm:$0xff]  ;;  %v28_v14 = vld [vmem:[%s1027_s0 + $0x18] sm:$0xff]  ;;  %v25_v15 = vld [vmem:[%s1027_s0] sm:$0xff]  ;;  %v816_v32 = vsub.s32 1, %v300_v27  ;;  %v818_v35 = vsub.s32 2, %v300_v27  ;;  %v820_v36 = vsub.s32 3, %v300_v27 }
   0x6   :  { %92 = vmatprep.subr.mxu0 %v31_v9  ;;  %169 = vmatprep.subr.mxu1 %v33_v10  ;;  %v27_v16 = vld [vmem:[%s1027_s0 + $0x10] sm:$0xff]  ;;  %v23_v17 = vld [vmem:[%s1028_s1] sm:$0xff]  ;;  %v44_v18 = vld [vmem:[%s1027_s0 + $0x98] sm:$0xff]  ;;  %v395_v37 = vsub.s32 6, %v300_v27  ;;  %v440_v39 = vsub.s32 7, %v300_v27 }
   0x7   :  { %93 = vmatpush1.msra.mxu0 %v30_v11  ;;  %170 = vmatpush1.msra.mxu1 %v32_v12  ;;  %v39_v19 = vld [vmem:[%s1027_s0 + $0x70] sm:$0xff]  ;;  %v24_v20 = vld [vmem:[%s1028_s1 + $0x8] sm:$0xff]  ;;  %v29_v23 = vld [vmem:[%s1027_s0 + $0x20] sm:$0xff] }
   0x8   :  { %94 = vmatprep.subr.mxu0 %v26_v13  ;;  %171 = vmatprep.subr.mxu1 %v28_v14  ;;  %v34_v21 = vld [vmem:[%s1027_s0 + $0x48] sm:$0xff]  ;;  %v45_v24 = vld [vmem:[%s1029_s2] sm:$0xff]  ;;  %v295_v4 = vld [vmem:[%s1030_s5 + $0x10] sm:$0xf] }
   0x9   :  { %95 = vmatpush1.msra.mxu0 %v25_v15  ;;  %172 = vmatpush1.msra.mxu1 %v27_v16  ;;  %v46_v25 = vld [vmem:[%s1029_s2 + $0x8] sm:$0xff]  ;;  %v293_v30 = vld [vmem:[%s1030_s5] sm:$0xff]  ;;  %v318_v9 = vrot.slane %v295_v4, %v814_v31  ;;  %v363_v16 = vrot.slane %v295_v4, %v816_v32 }
   0xa   :  { %667 = vmatmul.mubr.msk.f32.vlgmr.msra.gmra.mxu0 %vm57_vm0, %v23_v17  ;;  %669 = vmatmul.mubr.msk.f32.vlgmr.msra.gmra.mxu1 %vm57_vm0, %v23_v17  ;;  %v306_v33 = vrot.slane %v293_v30, %v305_v28  ;;  %v351_v34 = vrot.slane %v293_v30, %v350_v29  ;;  %v294_v38 = vld [vmem:[%s1030_s5 + $0x8] sm:$0xff]  ;;  %v302_v40 = vrot.slane %v293_v30, %v814_v31 }
   0xb   :  { %679 = vmatprep.subr.mxu0 %v44_v18  ;;  %134 = vmatprep.mubr.f32.mxu0 %v696_v3  ;;  %v347_v41 = vrot.slane %v293_v30, %v816_v32  ;;  %v392_v44 = vrot.slane %v293_v30, %v818_v35  ;;  %v437_v45 = vrot.slane %v293_v30, %v820_v36 }
   0xc   :  { %680 = vmatpush3.msra.mxu0 %v44_v18  ;;  %211 = vmatprep.mubr.f32.mxu1 %v696_v3  ;;  %v331_v42 = vrot.slane %v306_v33, %v814_v31  ;;  %v376_v43 = vrot.slane %v351_v34, %v816_v32  ;;  %v310_v46 = vrot.slane %v294_v38, %v814_v31 }
   0xd   :  { %681 = vmatprep.subr.mxu0 %v39_v19  ;;  %692 = vset.pattern.permute.xlu0 %v697_v22  ;;  %v355_v47 = vrot.slane %v294_v38, %v816_v32  ;;  %v396_v49 = vrot.slane %v293_v30, %v395_v37  ;;  %v404_v50 = vrot.slane %v294_v38, %v395_v37 }
   0xe   :  { %682 = vmatpush3.msra.mxu0 %v39_v19  ;;  %670 = vmatmul.mubr.msk.f32.gmra.mxu1 %vm57_vm0, %v24_v20  ;;  %v441_v51 = vrot.slane %v293_v30, %v440_v39  ;;  %v314_v52 = vrot.slane %v294_v38, %v305_v28  ;;  %v327_v53 = vrot.slane %v302_v40, %v814_v31 }
   0xf   :  { %668 = vmatmul.mubr.msk.f32.gmra.mxu0 %vm57_vm0, %v24_v20  ;;  %683 = vmatprep.subr.mxu0 %v34_v21  ;;  %v372_v54 = vrot.slane %v347_v41, %v816_v32  ;;  %v838_v55 = vsel %vm479_vm1, %v331_v42, %v376_v43  ;;  %v417_v56 = vrot.slane %v392_v44, %v818_v35 }
  0x10   :  { %684 = vmatpush3.msra.mxu0 %v34_v21  ;;  %687 = vmatprep.mubr.msk.f32.mxu0 %vm57_vm0, %v23_v17  ;;  %v462_v57 = vrot.slane %v437_v45, %v820_v36  ;;  %v449_v58 = vrot.slane %v294_v38, %v440_v39  ;;  %v335_v61 = vrot.slane %v310_v46, %v814_v31 }
  0x11   :  { %685 = vmatprep.subr.mxu0 %v29_v23  ;;  %49 = vperm.xlu0 %692, %v45_v24   ;;  %v359_v62 = vrot.slane %v294_v38, %v350_v29  ;;  %v380_v63 = vrot.slane %v355_v47, %v816_v32  ;;  %v400_v0 = vrot.slane %v294_v38, %v818_v35 }
  0x12   :  { %686 = vmatpush3.msra.mxu0 %v29_v23  ;;  %693 = vset.pattern.permute.xlu1 %v697_v22  ;;  %v421_v2 = vrot.slane %v396_v49, %v818_v35  ;;  %v429_v3 = vrot.slane %v404_v50, %v818_v35  ;;  %v445_v5 = vrot.slane %v294_v38, %v820_v36 }
  0x13   :  { %688 = vmatmul.mubr.msk.f32.vlgmr.msra.gmra.mxu0 %vm57_vm0, %v24_v20  ;;  %v466_v8 = vrot.slane %v441_v51, %v820_v36  ;;  %v339_v10 = vrot.slane %v314_v52, %v814_v31  ;;  %v858_v11 = vsel %vm479_vm1, %v327_v53, %v372_v54  ;;  %v867_v15 = vsel %vm479_vm1, %v417_v56, %v462_v57 }
  0x14   :  { %v384_v18 = vrot.slane %v359_v62, %v816_v32  ;;  %v872_v19 = vsel %vm479_vm1, %v335_v61, %v380_v63  ;;  %v408_v20 = vrot.slane %v295_v4, %v818_v35  ;;  %v425_v21 = vrot.slane %v400_v0, %v818_v35 }
  0x15   :  { %54 = vperm.xlu0 %692, %v46_v25   ;;  %v453_v25 = vrot.slane %v295_v4, %v820_v36  ;;  %v470_v26 = vrot.slane %v445_v5, %v820_v36  ;;  %v885_v28 = vsel %vm479_vm1, %v421_v2, %v466_v8  ;;  %v474_v29 = vrot.slane %v449_v58, %v820_v36 }
  0x16   :  { %v343_v30 = vrot.slane %v318_v9, %v814_v31  ;;  %v388_v37 = vrot.slane %v363_v16, %v816_v32  ;;  %v900_v43 = vsel %vm479_vm1, %v339_v10, %v384_v18  ;;  %v433_v31 = vrot.slane %v408_v20, %v818_v35 }
  0x17   :  { %v478_v45 = vrot.slane %v453_v25, %v820_v36  ;;  %v905_v46 = vsel %vm479_vm1, %v425_v21, %v470_v26  ;;  %v912_v49 = vsel %vm479_vm1, %v429_v3, %v474_v29 }
  0x18   :  { %v917_v52 = vsel %vm479_vm1, %v343_v30, %v388_v37 }
  0x19   :  { %v929_v58 = vsel %vm479_vm1, %v433_v31, %v478_v45 }
  0x8c   :  { %v833_v48 = vpop.permute.xlu0 %49 }
  0x90   :  { %v55_v14 = vpop.permute.xlu0 %54 }
  0xca   :  { %v130_v59 = vpop.f32.mrf.mxu0  ;;  %v207_v60 = vpop.f32.mrf.mxu1 }
  0xcb   :  { %v846_v1 = vadd.f32 %v130_v59, %v833_v48  ;;  %v861_v12 = vadd.f32 %v207_v60, %v833_v48 }
  0xcc   :  { %v132_v6 = vpop.f32.mrf.mxu0  ;;  %v209_v7 = vpop.f32.mrf.mxu1 }
  0xcd   :  { %v864_v13 = vadd.f32 %v132_v6, %v833_v48  ;;  %v490_v24 = vmul.f32 %v858_v11, %v846_v1  ;;  %v890_v33 = vadd.f32 %v209_v7, %v833_v48  ;;  %v492_v38 = vmul.f32 %v872_v19, %v861_v12 }
  0xce   :  { %v213_v17 = vpop.f32.mrf.mxu1 }
  0xcf   :  { %v491_v22 = vmul.f32 %v838_v55, %v864_v13  ;;  %v136_v23 = vpop.f32.mrf.mxu0  ;;  %v895_v40 = vadd.f32 %v213_v17, %v55_v14  ;;  %v493_v35 = vmul.f32 %v900_v43, %v890_v33 }
  0xd0   :  { %v882_v27 = vadd.f32 %v136_v23, %v55_v14  ;;  %v215_v42 = vpop.f32.mrf.mxu1 }
  0xd1   :  { %v138_v34 = vpop.f32.mrf.mxu0  ;;  %v500_v39 = vadd.f32 %v491_v22, %v490_v24  ;;  %v914_v50 = vadd.f32 %v215_v42, %v55_v14  ;;  %v497_v57 = vmul.f32 %v905_v46, %v895_v40 }
  0xd2   :  { %v897_v41 = vadd.f32 %v138_v34, %v55_v14  ;;  %v495_v32 = vmul.f32 %v867_v15, %v882_v27 }
  0xd3   :  { %v689_v44 = vpop.f32.mrf.mxu0  ;;  %v501_v36 = vadd.f32 %v500_v39, %v492_v38  ;;  %v498_v61 = vmul.f32 %v912_v49, %v914_v50 }
  0xd4   :  { %v496_v47 = vmul.f32 %v885_v28, %v897_v41  ;;  %v921_v54 = vadd.f32 %v689_v44, %v55_v14 }
  0xd5   :  { %v284_v51 = vpop.f32.mrf.mxu0  ;;  %v502_v62 = vadd.f32 %v501_v36, %v493_v35 }
  0xd6   :  { %v508_v53 = vadd.f32 %v496_v47, %v495_v32  ;;  %v924_v56 = vadd.f32 %v284_v51, %v833_v48  ;;  %v499_v48 = vmul.f32 %v929_v58, %v921_v54 }
  0xd8   :  { %v494_v59 = vmul.f32 %v917_v52, %v924_v56  ;;  %v509_v60 = vadd.f32 %v508_v53, %v497_v57  ;;  %v511_v3 = vsel %vm503_vm2, %v499_v48, 0.0 }
  0xda   :  { %v504_v63 = vsel %vm503_vm2, %v494_v59, 0.0  ;;  %v510_v2 = vadd.f32 %v509_v60, %v498_v61 }
  0xdb   :  { %v505_v0 = vadd.f32 %v504_v63, %v502_v62 }
  0xdc   :  { %v512_v4 = vadd.f32 %v511_v3, %v510_v2 }
  0xdd   :  { %506 = vadd.xlane.f32.xlu1 %v505_v0 }
  0xe1   :  { %513 = vadd.xlane.f32.xlu1 %v512_v4 }
 0x166   :  { %v507_v5 = vpop.xlane.xlu1 %506 }
 0x167   :  { %v516_v6 = vrot.slane %v507_v5, 4 }
 0x169   :  { %v518_v7 = vadd.f32 %v516_v6, %v507_v5 }
 0x16a   :  { %v514_v8 = vpop.xlane.xlu1 %513 }
 0x16b   :  { %v519_v9 = vadd.f32 %v518_v7, %v514_v8  ;;  %v521_v10 = vrot.slane %v514_v8, 4 }
 0x16d   :  { %v523_v14 = vadd.f32 %v521_v10, %v519_v9 }
 0x16f   :  { %v939_v16 = vmul.f32 0.00048828125, %v523_v14 }
 0x171   :  { %v526_v17 = vrot.slane %v939_v16, 4 }
 0x173   :  { %v528_v18 = vsel %vm479_vm1, %v939_v16, %v526_v17 }
 0x174   :  { %531 = vperm.xlu0 %692, %v528_v18  }
 0x1ef   :  { %v532_v20 = vpop.permute.xlu0 %531 }
 0x1f0   :  { %v539_v21 = vsub.f32 %v882_v27, %v532_v20  ;;  %v540_v22 = vsub.f32 %v897_v41, %v532_v20  ;;  %v541_v23 = vsub.f32 %v895_v40, %v532_v20  ;;  %v542_v24 = vsub.f32 %v914_v50, %v532_v20 }
 0x1f1   :  { %v543_v25 = vsub.f32 %v921_v54, %v532_v20  ;;  %v534_v26 = vsub.f32 %v846_v1, %v532_v20  ;;  %v535_v29 = vsub.f32 %v864_v13, %v532_v20  ;;  %v536_v30 = vsub.f32 %v861_v12, %v532_v20 }
 0x1f2   :  { %v549_v34 = vmul.f32 %v539_v21, %v867_v15  ;;  %v550_v37 = vmul.f32 %v540_v22, %v885_v28  ;;  %v551_v38 = vmul.f32 %v541_v23, %v905_v46  ;;  %v537_v42 = vsub.f32 %v890_v33, %v532_v20 }
 0x1f3   :  { %v553_v39 = vmul.f32 %v543_v25, %v929_v58  ;;  %v538_v44 = vsub.f32 %v924_v56, %v532_v20  ;;  %v544_v31 = vmul.f32 %v534_v26, %v858_v11  ;;  %v552_v45 = vmul.f32 %v542_v24, %v912_v49 }
 0x1f4   :  { %v559_v32 = vmul.f32 %v549_v34, %v549_v34  ;;  %v560_v47 = vmul.f32 %v550_v37, %v550_v37  ;;  %v545_v51 = vmul.f32 %v535_v29, %v838_v55  ;;  %v546_v35 = vmul.f32 %v536_v30, %v872_v19  ;;  %v588_v29 = vld [vmem:[%s1031_s3] sm:$0xf] }
 0x1f5   :  { %v561_v36 = vmul.f32 %v551_v38, %v551_v38  ;;  %v548_v57 = vmul.f32 %v538_v44, %v917_v52  ;;  %v554_v59 = vmul.f32 %v544_v31, %v544_v31  ;;  %v563_v60 = vmul.f32 %v553_v39, %v553_v39  ;;  %v592_v37 = vld [vmem:[%s1032_s4] sm:$0xf] }
 0x1f6   :  { %v571_v53 = vadd.f32 %v560_v47, %v559_v32  ;;  %v547_v61 = vmul.f32 %v537_v42, %v900_v43  ;;  %v555_v62 = vmul.f32 %v545_v51, %v545_v51  ;;  %v562_v63 = vmul.f32 %v552_v45, %v552_v45 }
 0x1f7   :  { %v556_v0 = vmul.f32 %v546_v35, %v546_v35  ;;  %v558_v4 = vmul.f32 %v548_v57, %v548_v57  ;;  %v574_v5 = vsel %vm503_vm2, %v563_v60, 0.0 }
 0x1f8   :  { %v572_v48 = vadd.f32 %v571_v53, %v561_v36  ;;  %v564_v2 = vadd.f32 %v555_v62, %v554_v59  ;;  %v557_v6 = vmul.f32 %v547_v61, %v547_v61 }
 0x1f9   :  { %v567_v10 = vsel %vm503_vm2, %v558_v4, 0.0 }
 0x1fa   :  { %v573_v3 = vadd.f32 %v572_v48, %v562_v63  ;;  %v565_v7 = vadd.f32 %v564_v2, %v556_v0 }
 0x1fc   :  { %v575_v8 = vadd.f32 %v574_v5, %v573_v3  ;;  %v566_v9 = vadd.f32 %v565_v7, %v557_v6 }
 0x1fe   :  { %576 = vadd.xlane.f32.xlu0 %v575_v8  ;;  %v568_v14 = vadd.f32 %v567_v10, %v566_v9 }
 0x200   :  { %569 = vadd.xlane.f32.xlu1 %v568_v14 }
 0x287   :  { %v577_v20 = vpop.xlane.xlu0 %576 }
 0x288   :  { %v584_v22 = vrot.slane %v577_v20, 4 }
 0x289   :  { %v570_v17 = vpop.xlane.xlu1 %569 }
 0x28a   :  { %v579_v18 = vrot.slane %v570_v17, 4 }
 0x28c   :  { %v581_v21 = vadd.f32 %v579_v18, %v570_v17 }
 0x28e   :  { %v582_v23 = vadd.f32 %v581_v21, %v577_v20 }
 0x290   :  { %v586_v24 = vadd.f32 %v584_v22, %v582_v23 }
 0x292   :  { %v587_v25 = vmul.f32 0.00048828125, %v586_v24 }
 0x294   :  { %v589_v26 = vadd.f32 1e-05, %v587_v25 }
 0x296   :  { %694 = vrsqrt.f32 %v589_v26 }
 0x2a3   :  { %v695_v30 = vpop.eup %694 }
 0x2a4   :  { %v591_v34 = vmul.f32 %v695_v30, %v588_v29 }
 0x2a6   :  { %v596_v38 = vrot.slane %v591_v34, 4  ;;  %v593_v39 = vmul.f32 %v591_v34, %v939_v16 }
 0x2a8   :  { %v598_v42 = vsel %vm479_vm1, %v591_v34, %v596_v38  ;;  %v594_v44 = vsub.f32 %v592_v37, %v593_v39 }
 0x2a9   :  { %605 = vperm.xlu1 %693, %v598_v42  }
 0x2aa   :  { %v600_v31 = vrot.slane %v594_v44, 4 }
 0x2ac   :  { %v602_v45 = vsel %vm479_vm1, %v594_v44, %v600_v31 }
 0x2ad   :  { %620 = vperm.xlu1 %693, %v602_v45  }
 0x324   :  { %v606_v32 = vpop.permute.xlu1 %605 }
 0x325   :  { %v608_v47 = vmul.f32 %v606_v32, %v846_v1  ;;  %v609_v51 = vmul.f32 %v606_v32, %v864_v13  ;;  %v610_v35 = vmul.f32 %v606_v32, %v861_v12  ;;  %v611_v36 = vmul.f32 %v606_v32, %v890_v33 }
 0x326   :  { %v612_v53 = vmul.f32 %v606_v32, %v924_v56  ;;  %v613_v16 = vmul.f32 %v606_v32, %v882_v27  ;;  %v614_v57 = vmul.f32 %v606_v32, %v897_v41  ;;  %v615_v59 = vmul.f32 %v606_v32, %v895_v40 }
 0x327   :  { %v616_v60 = vmul.f32 %v606_v32, %v914_v50  ;;  %v617_v61 = vmul.f32 %v606_v32, %v921_v54 }
 0x328   :  { %v621_v62 = vpop.permute.xlu1 %620 }
 0x329   :  { %v623_v1 = vadd.f32 %v621_v62, %v608_v47  ;;  %v624_v63 = vadd.f32 %v621_v62, %v609_v51  ;;  %v625_v13 = vadd.f32 %v621_v62, %v610_v35  ;;  %v626_v48 = vadd.f32 %v621_v62, %v611_v36 }
 0x32a   :  { %v627_v12 = vadd.f32 %v621_v62, %v612_v53  ;;  %v628_v0 = vadd.f32 %v621_v62, %v613_v16  ;;  %v629_v33 = vadd.f32 %v621_v62, %v614_v57  ;;  %v630_v2 = vadd.f32 %v621_v62, %v615_v59 }
 0x32b   :  { %v631_v56 = vadd.f32 %v621_v62, %v616_v60  ;;  %v632_v3 = vadd.f32 %v621_v62, %v617_v61  ;;  %v633_v27 = vmax.f32 %v623_v1, 0.0  ;;  %v634_v4 = vmax.f32 %v624_v63, 0.0 }
 0x32c   :  { %v635_v41 = vmax.f32 %v625_v13, 0.0  ;;  %v636_v5 = vmax.f32 %v626_v48, 0.0  ;;  %v637_v40 = vmax.f32 %v627_v12, 0.0  ;;  %v638_v6 = vmax.f32 %v628_v0, 0.0 }
 0x32d   :  { %v639_v50 = vmax.f32 %v629_v33, 0.0  ;;  %v640_v7 = vmax.f32 %v630_v2, 0.0  ;;  %v641_v54 = vmax.f32 %v631_v56, 0.0  ;;  %v642_v8 = vmax.f32 %v632_v3, 0.0 }
 0x32e   :  { %v643_v9 = vmul.f32 %v633_v27, %v858_v11  ;;  %v644_v10 = vmul.f32 %v634_v4, %v838_v55  ;;  %v645_v14 = vmul.f32 %v635_v41, %v872_v19  ;;  %v646_v17 = vmul.f32 %v636_v5, %v900_v43 }
 0x32f   :  { %v647_v18 = vmul.f32 %v637_v40, %v917_v52  ;;  %v648_v20 = vmul.f32 %v638_v6, %v867_v15  ;;  %v649_v21 = vmul.f32 %v639_v50, %v885_v28  ;;  %v650_v22 = vmul.f32 %v640_v7, %v905_v46 }
 0x330   :  { %v651_v23 = vmul.f32 %v641_v54, %v912_v49  ;;  %v652_v24 = vmul.f32 %v642_v8, %v929_v58  ;;  %653 = vst [vmem:[%s1033_s6] sm:$0xff] %v643_v9  ;;  %654 = vst [vmem:[%s1033_s6 + $0x8] sm:$0xff] %v644_v10 }
 0x331   :  { %655 = vst [vmem:[%s1033_s6 + $0x10] sm:$0xff] %v645_v14  ;;  %656 = vst [vmem:[%s1033_s6 + $0x18] sm:$0xff] %v646_v17 }
 0x332   :  { %657 = vst.msk [vmem:[%s1033_s6 + $0x20] sm:$0xff] %vm503_vm2, %v647_v18  ;;  %658 = vst [vmem:[%s1033_s6 + $0x28] sm:$0xff] %v648_v20 }
 0x333   :  { %659 = vst [vmem:[%s1033_s6 + $0x30] sm:$0xff] %v649_v21  ;;  %660 = vst [vmem:[%s1033_s6 + $0x38] sm:$0xff] %v650_v22 }
 0x334   :  { %661 = vst [vmem:[%s1033_s6 + $0x40] sm:$0xff] %v651_v23  ;;  %662 = vst.msk [vmem:[%s1033_s6 + $0x48] sm:$0xff] %vm503_vm2, %v652_v24 }

// kernel: decoder_forward.9
= control target key start
LH: loop header
LB: loop body
LE: loop exit
PB: predicated region body
PF: predicated region fallthrough
CT: control target
= control target key end

     0   :  { %v867_v3 = vmov 0.0   ;;  %vm64_vm0 = vcmask 130048   ;;  %v868_v40 = vmov 0   ;;  %vm817_vm1 = vcmask 15360   ;;  %s1215_s0 = inlined_call_operand.vmem [shape: f32[16,2178], index: 0, kind: input, shape index: {}]   ;;  %s1216_s1 = inlined_call_operand.vmem [shape: f32[12,16], index: 1, kind: input, shape index: {}]   ;;  %s1217_s2 = inlined_call_operand.vmem [shape: f32[12,1], index: 2, kind: input, shape index: {}]   ;;  %s1218_s3 = inlined_call_operand.vmem [shape: f32[12,2178], index: 3, kind: output, shape index: {}]  }
   0x1   :  { %v35_v0 = vld [vmem:[%s1215_s0 + $0x98] sm:$0xff]  ;;  %v34_v1 = vld [vmem:[%s1215_s0 + $0x90] sm:$0xff]  ;;  %v17_v2 = vld [vmem:[%s1215_s0 + $0x8] sm:$0xff]  ;;  %135 = vmatprep.mubr.f32.mxu0 %v867_v3  ;;  %141 = vmatprep.mubr.f32.mxu1 %v867_v3  ;;  %vm836_vm2 = vcmask 11264  }
   0x2   :  { %99 = vmatprep.subr.mxu0 %v35_v0  ;;  %860 = vmatprep.subr.mxu1 %v35_v0  ;;  %v16_v4 = vld [vmem:[%s1215_s0] sm:$0xff]  ;;  %v911_v6 = vld [vmem:[%s1216_s1 + $0x8] sm:$0xf]  ;;  %v39_v8 = vld [vmem:[%s1215_s0 + $0xb8] sm:$0xff] }
   0x3   :  { %100 = vmatpush1.msra.mxu0 %v34_v1  ;;  %862 = vmatpush1.msra.mxu1 %v34_v1  ;;  %v906_v5 = vld [vmem:[%s1216_s1] sm:$0xff]  ;;  %v37_v7 = vld [vmem:[%s1215_s0 + $0xa8] sm:$0xff]  ;;  %v38_v10 = vld [vmem:[%s1215_s0 + $0xb0] sm:$0xff] }
   0x4   :  { %101 = vmatprep.subr.mxu0 %v17_v2  ;;  %861 = vmatprep.subr.mxu1 %v17_v2  ;;  %v36_v9 = vld [vmem:[%s1215_s0 + $0xa0] sm:$0xff]  ;;  %v19_v11 = vld [vmem:[%s1215_s0 + $0x18] sm:$0xff]  ;;  %v21_v12 = vld [vmem:[%s1215_s0 + $0x28] sm:$0xff] }
   0x5   :  { %102 = vmatpush1.msra.mxu0 %v16_v4  ;;  %863 = vmatpush1.msra.mxu1 %v16_v4  ;;  %v18_v13 = vld [vmem:[%s1215_s0 + $0x10] sm:$0xff]  ;;  %v20_v14 = vld [vmem:[%s1215_s0 + $0x20] sm:$0xff]  ;;  %v41_v15 = vld [vmem:[%s1215_s0 + $0xc8] sm:$0xff] }
   0x6   :  { %842 = vmatmul.mubr.msk.f32.vlgmr.msra.gmra.mxu0 %vm64_vm0, %v906_v5  ;;  %843 = vmatmul.mubr.msk.f32.vlgmr.msra.gmra.mxu1 %vm64_vm0, %v911_v6  ;;  %v43_v16 = vld [vmem:[%s1215_s0 + $0xd8] sm:$0xff]  ;;  %v40_v17 = vld [vmem:[%s1215_s0 + $0xc0] sm:$0xff]  ;;  %v42_v18 = vld [vmem:[%s1215_s0 + $0xd0] sm:$0xff] }
   0x7   :  { %176 = vmatprep.subr.mxu1 %v37_v7  ;;  %253 = vmatprep.subr.mxu0 %v39_v8  ;;  %v23_v19 = vld [vmem:[%s1215_s0 + $0x38] sm:$0xff]  ;;  %v25_v20 = vld [vmem:[%s1215_s0 + $0x48] sm:$0xff]  ;;  %v22_v21 = vld [vmem:[%s1215_s0 + $0x30] sm:$0xff] }
   0x8   :  { %177 = vmatpush1.msra.mxu1 %v36_v9  ;;  %254 = vmatpush1.msra.mxu0 %v38_v10  ;;  %v24_v22 = vld [vmem:[%s1215_s0 + $0x40] sm:$0xff]  ;;  %v45_v23 = vld [vmem:[%s1215_s0 + $0xe8] sm:$0xff]  ;;  %v47_v24 = vld [vmem:[%s1215_s0 + $0xf8] sm:$0xff] }
   0x9   :  { %178 = vmatprep.subr.mxu1 %v19_v11  ;;  %255 = vmatprep.subr.mxu0 %v21_v12  ;;  %v44_v25 = vld [vmem:[%s1215_s0 + $0xe0] sm:$0xff]  ;;  %v46_v26 = vld [vmem:[%s1215_s0 + $0xf0] sm:$0xff]  ;;  %v27_v27 = vld [vmem:[%s1215_s0 + $0x58] sm:$0xff] }
   0xa   :  { %179 = vmatpush1.msra.mxu1 %v18_v13  ;;  %212 = vmatprep.mubr.f32.mxu1 %v867_v3  ;;  %v29_v28 = vld [vmem:[%s1215_s0 + $0x68] sm:$0xff]  ;;  %v26_v29 = vld [vmem:[%s1215_s0 + $0x50] sm:$0xff]  ;;  %v28_v30 = vld [vmem:[%s1215_s0 + $0x60] sm:$0xff] }
   0xb   :  { %256 = vmatpush1.msra.mxu0 %v20_v14  ;;  %289 = vmatprep.mubr.f32.mxu0 %v867_v3  ;;  %v49_v31 = vld [vmem:[%s1215_s0 + $0x108] sm:$0xff]  ;;  %v51_v32 = vld [vmem:[%s1215_s0 + $0x118] sm:$0xff]  ;;  %v48_v33 = vld [vmem:[%s1215_s0 + $0x100] sm:$0xff] }
   0xc   :  { %844 = vmatmul.mubr.msk.f32.vlgmr.msra.gmra.mxu1 %vm64_vm0, %v906_v5  ;;  %846 = vmatmul.mubr.msk.f32.vlgmr.msra.gmra.mxu0 %vm64_vm0, %v906_v5  ;;  %v50_v34 = vld [vmem:[%s1215_s0 + $0x110] sm:$0xff]  ;;  %v31_v35 = vld [vmem:[%s1215_s0 + $0x78] sm:$0xff]  ;;  %v33_v36 = vld [vmem:[%s1215_s0 + $0x88] sm:$0xff] }
   0xd   :  { %330 = vmatprep.subr.mxu1 %v41_v15  ;;  %407 = vmatprep.subr.mxu0 %v43_v16  ;;  %v30_v37 = vld [vmem:[%s1215_s0 + $0x70] sm:$0xff]  ;;  %v32_v38 = vld [vmem:[%s1215_s0 + $0x80] sm:$0xff]  ;;  %v53_v41 = vld [vmem:[%s1217_s2 + $0x8] sm:$0xf] }
   0xe   :  { %331 = vmatpush1.msra.mxu1 %v40_v17  ;;  %408 = vmatpush1.msra.mxu0 %v42_v18  ;;  %v52_v39 = vld [vmem:[%s1217_s2] sm:$0xff] }
   0xf   :  { %218 = vmatprep.mubr.f32.mxu1 %v867_v3  ;;  %295 = vmatprep.mubr.f32.mxu0 %v867_v3 }
  0x10   :  { %845 = vmatmul.mubr.msk.f32.gmra.mxu1 %vm64_vm0, %v911_v6  ;;  %847 = vmatmul.mubr.msk.f32.gmra.mxu0 %vm64_vm0, %v911_v6 }
  0x11   :  { %332 = vmatprep.subr.mxu1 %v23_v19  ;;  %409 = vmatprep.subr.mxu0 %v25_v20 }
  0x12   :  { %333 = vmatpush1.msra.mxu1 %v22_v21  ;;  %410 = vmatpush1.msra.mxu0 %v24_v22 }
  0x13   :  { %366 = vmatprep.mubr.f32.mxu1 %v867_v3  ;;  %443 = vmatprep.mubr.f32.mxu0 %v867_v3 }
  0x14   :  { %848 = vmatmul.mubr.msk.f32.vlgmr.msra.gmra.mxu1 %vm64_vm0, %v906_v5  ;;  %850 = vmatmul.mubr.msk.f32.vlgmr.msra.gmra.mxu0 %vm64_vm0, %v906_v5 }
  0x15   :  { %484 = vmatprep.subr.mxu1 %v45_v23  ;;  %561 = vmatprep.subr.mxu0 %v47_v24 }
  0x16   :  { %485 = vmatpush1.msra.mxu1 %v44_v25  ;;  %562 = vmatpush1.msra.mxu0 %v46_v26 }
  0x17   :  { %372 = vmatprep.mubr.f32.mxu1 %v867_v3  ;;  %449 = vmatprep.mubr.f32.mxu0 %v867_v3 }
  0x18   :  { %849 = vmatmul.mubr.msk.f32.gmra.mxu1 %vm64_vm0, %v911_v6  ;;  %851 = vmatmul.mubr.msk.f32.gmra.mxu0 %vm64_vm0, %v911_v6 }
  0x19   :  { %486 = vmatprep.subr.mxu1 %v27_v27  ;;  %563 = vmatprep.subr.mxu0 %v29_v28 }
  0x1a   :  { %487 = vmatpush1.msra.mxu1 %v26_v29  ;;  %564 = vmatpush1.msra.mxu0 %v28_v30 }
  0x1b   :  { %520 = vmatprep.mubr.f32.mxu1 %v867_v3  ;;  %597 = vmatprep.mubr.f32.mxu0 %v867_v3 }
  0x1c   :  { %852 = vmatmul.mubr.msk.f32.vlgmr.msra.gmra.mxu1 %vm64_vm0, %v906_v5  ;;  %854 = vmatmul.mubr.msk.f32.vlgmr.msra.gmra.mxu0 %vm64_vm0, %v906_v5 }
  0x1d   :  { %638 = vmatprep.subr.mxu1 %v49_v31  ;;  %715 = vmatprep.subr.mxu0 %v51_v32 }
  0x1e   :  { %639 = vmatpush1.msra.mxu1 %v48_v33  ;;  %716 = vmatpush1.msra.mxu0 %v50_v34 }
  0x1f   :  { %526 = vmatprep.mubr.f32.mxu1 %v867_v3  ;;  %603 = vmatprep.mubr.f32.mxu0 %v867_v3 }
  0x20   :  { %853 = vmatmul.mubr.msk.f32.gmra.mxu1 %vm64_vm0, %v911_v6  ;;  %855 = vmatmul.mubr.msk.f32.gmra.mxu0 %vm64_vm0, %v911_v6 }
  0x21   :  { %640 = vmatprep.subr.mxu1 %v31_v35  ;;  %717 = vmatprep.subr.mxu0 %v33_v36 }
  0x22   :  { %641 = vmatpush1.msra.mxu1 %v30_v37  ;;  %718 = vmatpush1.msra.mxu0 %v32_v38 }
  0x23   :  { %674 = vmatprep.mubr.f32.mxu1 %v867_v3  ;;  %751 = vmatprep.mubr.f32.mxu0 %v867_v3 }
  0x24   :  { %856 = vmatmul.mubr.msk.f32.vlgmr.msra.gmra.mxu1 %vm64_vm0, %v906_v5  ;;  %858 = vmatmul.mubr.msk.f32.vlgmr.msra.gmra.mxu0 %vm64_vm0, %v906_v5 }
  0x25   :  { %680 = vmatprep.mubr.f32.mxu1 %v867_v3  ;;  %757 = vmatprep.mubr.f32.mxu0 %v867_v3 }
  0x26   :  { %866 = vset.pattern.permute.xlu0 %v868_v40 }
  0x27   :  { %56 = vperm.xlu0 %866, %v52_v39  }
  0x28   :  { %857 = vmatmul.mubr.msk.f32.gmra.mxu1 %vm64_vm0, %v911_v6  ;;  %859 = vmatmul.mubr.msk.f32.gmra.mxu0 %vm64_vm0, %v911_v6 }
  0x2b   :  { %61 = vperm.xlu0 %866, %v53_v41  }
  0xa2   :  { %v1067_v42 = vpop.permute.xlu0 %56 }
  0xa6   :  { %v1069_v43 = vpop.permute.xlu0 %61 }
  0xc6   :  { %v137_v44 = vpop.f32.mrf.mxu0  ;;  %v143_v45 = vpop.f32.mrf.mxu1 }
  0xc7   :  { %v138_v46 = vadd.f32 %v137_v44, %v1067_v42  ;;  %v144_v47 = vadd.f32 %v143_v45, %v1069_v43 }
  0xc8   :  { %v139_v48 = vpop.f32.mrf.mxu0  ;;  %v145_v49 = vpop.f32.mrf.mxu1 }
  0xc9   :  { %v764_v50 = vmax.f32 %v138_v46, 0.0  ;;  %v782_v51 = vmax.f32 %v144_v47, 0.0  ;;  %v140_v52 = vadd.f32 %v139_v48, %v1067_v42  ;;  %v146_v53 = vadd.f32 %v145_v49, %v1069_v43 }
  0xcb   :  { %800 = vst [vmem:[%s1218_s3] sm:$0xff] %v764_v50  ;;  %819 = vst [vmem:[%s1218_s3 + $0x90] sm:$0xf] %v782_v51  ;;  %v765_v54 = vmax.f32 %v140_v52, 0.0  ;;  %v783_v55 = vmax.f32 %v146_v53, 0.0 }
  0xcc   :  { %v214_v56 = vpop.f32.mrf.mxu1  ;;  %v291_v57 = vpop.f32.mrf.mxu0 }
  0xcd   :  { %801 = vst [vmem:[%s1218_s3 + $0x8] sm:$0xff] %v765_v54  ;;  %820 = vst [vmem:[%s1218_s3 + $0x98] sm:$0xf] %v783_v55  ;;  %v215_v58 = vadd.f32 %v214_v56, %v1067_v42  ;;  %v292_v59 = vadd.f32 %v291_v57, %v1067_v42 }
  0xce   :  { %v216_v60 = vpop.f32.mrf.mxu1  ;;  %v293_v61 = vpop.f32.mrf.mxu0 }
  0xcf   :  { %v766_v62 = vmax.f32 %v215_v58, 0.0  ;;  %v768_v63 = vmax.f32 %v292_v59, 0.0  ;;  %v217_v0 = vadd.f32 %v216_v60, %v1067_v42  ;;  %v294_v1 = vadd.f32 %v293_v61, %v1067_v42 }
  0xd0   :  { %v220_v2 = vpop.f32.mrf.mxu1  ;;  %v297_v3 = vpop.f32.mrf.mxu0 }
  0xd1   :  { %802 = vst [vmem:[%s1218_s3 + $0x10] sm:$0xff] %v766_v62  ;;  %804 = vst [vmem:[%s1218_s3 + $0x20] sm:$0xff] %v768_v63  ;;  %v767_v4 = vmax.f32 %v217_v0, 0.0  ;;  %v769_v5 = vmax.f32 %v294_v1, 0.0  ;;  %v221_v6 = vadd.f32 %v220_v2, %v1069_v43  ;;  %v298_v7 = vadd.f32 %v297_v3, %v1069_v43 }
  0xd2   :  { %v222_v8 = vpop.f32.mrf.mxu1  ;;  %v299_v9 = vpop.f32.mrf.mxu0 }
  0xd3   :  { %803 = vst [vmem:[%s1218_s3 + $0x18] sm:$0xff] %v767_v4  ;;  %805 = vst [vmem:[%s1218_s3 + $0x28] sm:$0xff] %v769_v5  ;;  %v784_v10 = vmax.f32 %v221_v6, 0.0  ;;  %v786_v11 = vmax.f32 %v298_v7, 0.0  ;;  %v223_v12 = vadd.f32 %v222_v8, %v1069_v43  ;;  %v300_v13 = vadd.f32 %v299_v9, %v1069_v43 }
  0xd4   :  { %v368_v14 = vpop.f32.mrf.mxu1  ;;  %v445_v15 = vpop.f32.mrf.mxu0 }
  0xd5   :  { %821 = vst [vmem:[%s1218_s3 + $0xa0] sm:$0xf] %v784_v10  ;;  %823 = vst [vmem:[%s1218_s3 + $0xb0] sm:$0xf] %v786_v11  ;;  %v785_v16 = vmax.f32 %v223_v12, 0.0  ;;  %v787_v17 = vmax.f32 %v300_v13, 0.0  ;;  %v369_v18 = vadd.f32 %v368_v14, %v1067_v42  ;;  %v446_v19 = vadd.f32 %v445_v15, %v1067_v42 }
  0xd6   :  { %v370_v20 = vpop.f32.mrf.mxu1  ;;  %v447_v21 = vpop.f32.mrf.mxu0 }
  0xd7   :  { %822 = vst [vmem:[%s1218_s3 + $0xa8] sm:$0xf] %v785_v16  ;;  %824 = vst [vmem:[%s1218_s3 + $0xb8] sm:$0xf] %v787_v17  ;;  %v770_v22 = vmax.f32 %v369_v18, 0.0  ;;  %v772_v23 = vmax.f32 %v446_v19, 0.0  ;;  %v371_v24 = vadd.f32 %v370_v20, %v1067_v42  ;;  %v448_v25 = vadd.f32 %v447_v21, %v1067_v42 }
  0xd8   :  { %v374_v26 = vpop.f32.mrf.mxu1  ;;  %v451_v27 = vpop.f32.mrf.mxu0 }
  0xd9   :  { %806 = vst [vmem:[%s1218_s3 + $0x30] sm:$0xff] %v770_v22  ;;  %808 = vst [vmem:[%s1218_s3 + $0x40] sm:$0xff] %v772_v23  ;;  %v771_v28 = vmax.f32 %v371_v24, 0.0  ;;  %v773_v29 = vmax.f32 %v448_v25, 0.0  ;;  %v375_v30 = vadd.f32 %v374_v26, %v1069_v43  ;;  %v452_v31 = vadd.f32 %v451_v27, %v1069_v43 }
  0xda   :  { %v376_v32 = vpop.f32.mrf.mxu1  ;;  %v453_v33 = vpop.f32.mrf.mxu0 }
  0xdb   :  { %807 = vst [vmem:[%s1218_s3 + $0x38] sm:$0xff] %v771_v28  ;;  %809 = vst [vmem:[%s1218_s3 + $0x48] sm:$0xff] %v773_v29  ;;  %v788_v34 = vmax.f32 %v375_v30, 0.0  ;;  %v790_v35 = vmax.f32 %v452_v31, 0.0  ;;  %v377_v36 = vadd.f32 %v376_v32, %v1069_v43  ;;  %v454_v37 = vadd.f32 %v453_v33, %v1069_v43 }
  0xdc   :  { %v522_v38 = vpop.f32.mrf.mxu1  ;;  %v599_v39 = vpop.f32.mrf.mxu0 }
  0xdd   :  { %825 = vst [vmem:[%s1218_s3 + $0xc0] sm:$0xf] %v788_v34  ;;  %827 = vst [vmem:[%s1218_s3 + $0xd0] sm:$0xf] %v790_v35  ;;  %v789_v40 = vmax.f32 %v377_v36, 0.0  ;;  %v791_v41 = vmax.f32 %v454_v37, 0.0  ;;  %v523_v44 = vadd.f32 %v522_v38, %v1067_v42  ;;  %v600_v45 = vadd.f32 %v599_v39, %v1067_v42 }
  0xde   :  { %v524_v46 = vpop.f32.mrf.mxu1  ;;  %v601_v47 = vpop.f32.mrf.mxu0 }
  0xdf   :  { %826 = vst [vmem:[%s1218_s3 + $0xc8] sm:$0xf] %v789_v40  ;;  %828 = vst [vmem:[%s1218_s3 + $0xd8] sm:$0xf] %v791_v41  ;;  %v774_v48 = vmax.f32 %v523_v44, 0.0  ;;  %v776_v49 = vmax.f32 %v600_v45, 0.0  ;;  %v525_v50 = vadd.f32 %v524_v46, %v1067_v42  ;;  %v602_v51 = vadd.f32 %v601_v47, %v1067_v42 }
  0xe0   :  { %v528_v52 = vpop.f32.mrf.mxu1  ;;  %v605_v53 = vpop.f32.mrf.mxu0 }
  0xe1   :  { %810 = vst [vmem:[%s1218_s3 + $0x50] sm:$0xff] %v774_v48  ;;  %812 = vst [vmem:[%s1218_s3 + $0x60] sm:$0xff] %v776_v49  ;;  %v775_v54 = vmax.f32 %v525_v50, 0.0  ;;  %v777_v55 = vmax.f32 %v602_v51, 0.0  ;;  %v529_v56 = vadd.f32 %v528_v52, %v1069_v43  ;;  %v606_v57 = vadd.f32 %v605_v53, %v1069_v43 }
  0xe2   :  { %v530_v58 = vpop.f32.mrf.mxu1  ;;  %v607_v59 = vpop.f32.mrf.mxu0 }
  0xe3   :  { %811 = vst [vmem:[%s1218_s3 + $0x58] sm:$0xff] %v775_v54  ;;  %813 = vst [vmem:[%s1218_s3 + $0x68] sm:$0xff] %v777_v55  ;;  %v792_v60 = vmax.f32 %v529_v56, 0.0  ;;  %v794_v61 = vmax.f32 %v606_v57, 0.0  ;;  %v531_v62 = vadd.f32 %v530_v58, %v1069_v43  ;;  %v608_v63 = vadd.f32 %v607_v59, %v1069_v43 }
  0xe4   :  { %v676_v0 = vpop.f32.mrf.mxu1  ;;  %v753_v1 = vpop.f32.mrf.mxu0 }
  0xe5   :  { %829 = vst [vmem:[%s1218_s3 + $0xe0] sm:$0xf] %v792_v60  ;;  %831 = vst [vmem:[%s1218_s3 + $0xf0] sm:$0xf] %v794_v61  ;;  %v793_v2 = vmax.f32 %v531_v62, 0.0  ;;  %v795_v3 = vmax.f32 %v608_v63, 0.0  ;;  %v677_v4 = vadd.f32 %v676_v0, %v1067_v42  ;;  %v754_v5 = vadd.f32 %v753_v1, %v1067_v42 }
  0xe6   :  { %v678_v6 = vpop.f32.mrf.mxu1  ;;  %v755_v7 = vpop.f32.mrf.mxu0 }
  0xe7   :  { %830 = vst [vmem:[%s1218_s3 + $0xe8] sm:$0xf] %v793_v2  ;;  %832 = vst [vmem:[%s1218_s3 + $0xf8] sm:$0xf] %v795_v3  ;;  %v778_v8 = vmax.f32 %v677_v4, 0.0  ;;  %v780_v9 = vmax.f32 %v754_v5, 0.0  ;;  %v679_v10 = vadd.f32 %v678_v6, %v1067_v42  ;;  %v756_v11 = vadd.f32 %v755_v7, %v1067_v42 }
  0xe8   :  { %v682_v12 = vpop.f32.mrf.mxu1  ;;  %v759_v13 = vpop.f32.mrf.mxu0 }
  0xe9   :  { %814 = vst [vmem:[%s1218_s3 + $0x70] sm:$0xff] %v778_v8  ;;  %816 = vst [vmem:[%s1218_s3 + $0x80] sm:$0xff] %v780_v9  ;;  %v779_v14 = vmax.f32 %v679_v10, 0.0  ;;  %v781_v15 = vmax.f32 %v756_v11, 0.0  ;;  %v683_v16 = vadd.f32 %v682_v12, %v1069_v43  ;;  %v760_v17 = vadd.f32 %v759_v13, %v1069_v43 }
  0xea   :  { %v684_v18 = vpop.f32.mrf.mxu1  ;;  %v761_v19 = vpop.f32.mrf.mxu0 }
  0xeb   :  { %815 = vst [vmem:[%s1218_s3 + $0x78] sm:$0xff] %v779_v14  ;;  %818 = vst.msk [vmem:[%s1218_s3 + $0x88] sm:$0xff] %vm817_vm1, %v781_v15  ;;  %v796_v42 = vmax.f32 %v683_v16, 0.0  ;;  %v798_v20 = vmax.f32 %v760_v17, 0.0  ;;  %v685_v21 = vadd.f32 %v684_v18, %v1069_v43  ;;  %v762_v22 = vadd.f32 %v761_v19, %v1069_v43 }
  0xed   :  { %833 = vst [vmem:[%s1218_s3 + $0x100] sm:$0xf] %v796_v42  ;;  %835 = vst [vmem:[%s1218_s3 + $0x110] sm:$0xf] %v798_v20  ;;  %v797_v23 = vmax.f32 %v685_v21, 0.0  ;;  %v799_v24 = vmax.f32 %v762_v22, 0.0 }
  0xef   :  { %834 = vst [vmem:[%s1218_s3 + $0x108] sm:$0xf] %v797_v23  ;;  %837 = vst.msk [vmem:[%s1218_s3 + $0x118] sm:$0xf] %vm836_vm2, %v799_v24 }

</bundles_post_ra>
